<compile_context>
chip_gen: v6e
topology: v6e:2x2x1
jax: 0.10.0
libtpu: 0.0.40
codegen_flags: <defaults>
</compile_context>

<pallas_src>
import functools

import numpy as np
import jax
import jax.numpy as jnp
from jax.experimental import pallas as pl
from jax.experimental.pallas import tpu as pltpu

IGNORE_THRESHOLD = 0.5
EPS = 1e-7
_PLANES = 5  # x, y, w, h, conf logits streamed to the kernel per image


def _device_info():
    kind = ""
    try:
        kind = jax.devices()[0].device_kind.lower()
    except Exception:
        pass
    n_tc = 2 if "v7" in kind else 1
    try:
        vmem_cap = int(pltpu.get_tpu_info().vmem_capacity_bytes)
    except Exception:
        vmem_cap = (64 if "v7" in kind else 128) * 1024 * 1024
    return n_tc, vmem_cap


def _make_kernel(R, G, blocks_per_split, max_t, H, W, ahw, anchors_l):
    """Dense path: box decode, ignore-IoU vs GT, objectness BCE over (noobj|obj)."""
    A = len(anchors_l)
    hw = float(H * W)

    def kernel(pred_ref, pos_ref, tgt_ref, ivalid_ref, out_ref, geo_ref):
        c = pl.program_id(0)          # core split (parallel / core-parallel)
        blk = pl.program_id(1)        # image block within split (accumulated)

        @pl.when(blk == 0)
        def _init():
            out_ref[...] = jnp.zeros_like(out_ref)
            # geo (grid offsets, anchor sizes, flat cell index) built once per
            # core into VMEM scratch instead of being streamed from HBM.
            rows = jax.lax.broadcasted_iota(jnp.int32, (R, 128), 0)
            lanes = jax.lax.broadcasted_iota(jnp.int32, (R, 128), 1)
            cellf = (rows * 128 + lanes).astype(jnp.float32)
            a = jnp.floor(cellf / hw)
            rem = cellf - a * hw
            gy = jnp.floor(rem / float(W))
            gx = rem - gy * float(W)
            aw = jnp.zeros_like(cellf)
            ah = jnp.zeros_like(cellf)
            for k in range(A):
                sel = a == float(k)
                aw = jnp.where(sel, anchors_l[k][0], aw)
                ah = jnp.where(sel, anchors_l[k][1], ah)
            geo_ref[0] = gx
            geo_ref[1] = gy
            geo_ref[2] = aw
            geo_ref[3] = ah
            geo_ref[4] = cellf

        gx = geo_ref[0]
        gy = geo_ref[1]
        aw = geo_ref[2]
        ah = geo_ref[3]
        cellf = geo_ref[4]
        cell_valid = cellf < float(ahw)      # masks lane/sublane padding cells

        conf_row = jnp.zeros((1, 128), jnp.float32)
        nconf_row = jnp.zeros((1, 128), jnp.float32)

        for g in range(G):                    # G images packed per block
            img = (c * blocks_per_split + blk) * G + g
            p0 = g * _PLANES
            xs = jax.nn.sigmoid(pred_ref[0, p0 + 0].astype(jnp.float32))
            ys = jax.nn.sigmoid(pred_ref[0, p0 + 1].astype(jnp.float32))
            pw = jnp.exp(pred_ref[0, p0 + 2].astype(jnp.float32)) * aw
            ph = jnp.exp(pred_ref[0, p0 + 3].astype(jnp.float32)) * ah
            z_conf = pred_ref[0, p0 + 4].astype(jnp.float32)
            px = xs + gx
            py = ys + gy
            hwd = pw * 0.5
            hhd = ph * 0.5
            b1_minx = px - hwd
            b1_maxx = px + hwd
            b1_miny = py - hhd
            b1_maxy = py + hhd
            area1 = pw * ph

            # obj mask rebuilt from <= max_t positive flat-cell indices (SMEM)
            pbase = img * max_t

            def obj_step(t, acc):
                return jnp.maximum(acc, (cellf == pos_ref[pbase + t]).astype(jnp.float32))

            obj_f = jnp.zeros_like(cellf)
            if max_t <= 8:
                for t in range(max_t):
                    obj_f = obj_step(t, obj_f)
            else:
                obj_f = jax.lax.fori_loop(0, max_t, obj_step, obj_f, unroll=4)
            obj = obj_f > 0.5

            # ignore pass: max IoU of every decoded box vs this image's GT boxes
            tbase = img * max_t * 4

            def ignore_step(t, ign_acc):
                gxb = tgt_ref[tbase + 4 * t + 0]
                gyb = tgt_ref[tbase + 4 * t + 1]
                gwb = tgt_ref[tbase + 4 * t + 2]
                ghb = tgt_ref[tbase + 4 * t + 3]
                a_minx = gxb - gwb * 0.5
                a_maxx = gxb + gwb * 0.5
                a_miny = gyb - ghb * 0.5
                a_maxy = gyb + ghb * 0.5
                iw = jnp.maximum(jnp.minimum(a_maxx, b1_maxx) - jnp.maximum(a_minx, b1_minx), 0.0)
                ih = jnp.maximum(jnp.minimum(a_maxy, b1_maxy) - jnp.maximum(a_miny, b1_miny), 0.0)
                inter = iw * ih
                union = gwb * ghb + area1 - inter      # zero-padded GT -> IoU 0
                return jnp.maximum(ign_acc, inter * pl.reciprocal(union + EPS, approx=True))

            ign = jnp.zeros_like(cellf)
            if max_t <= 8:
                for t in range(max_t):
                    ign = ignore_step(t, ign)
            else:
                ign = jax.lax.fori_loop(0, max_t, ignore_step, ign, unroll=4)

            noobj = jnp.logical_and(jnp.logical_not(obj), ign <= IGNORE_THRESHOLD)
            conf_mask = jnp.logical_and(cell_valid, jnp.logical_or(noobj, obj))
            # objectness BCE from logits: max(z,0) - z*t + log(1 + exp(-|z|))
            bce = (jnp.maximum(z_conf, 0.0) - z_conf * obj_f
                   + jnp.log(1.0 + jnp.exp(-jnp.abs(z_conf))))
            vimg = ivalid_ref[img]                     # 0 for batch-padding images
            conf_row = conf_row + vimg * jnp.sum(
                jnp.where(conf_mask, bce, 0.0), axis=0, keepdims=True)
            nconf_row = nconf_row + vimg * jnp.sum(
                conf_mask.astype(jnp.float32), axis=0, keepdims=True)

        rowi = jax.lax.broadcasted_iota(jnp.int32, (8, 128), 0)
        partial = (jnp.where(rowi == 0, conf_row, 0.0)
                   + jnp.where(rowi == 1, nconf_row, 0.0))
        out_ref[...] += partial[None]

    return kernel


@functools.partial(jax.jit, static_argnames=(
    "A", "attrs", "R", "H", "W", "G", "blocks_per_split", "n_split", "max_t",
    "anchors_l", "num_classes", "box_ratio", "obj_ratio", "cls_ratio",
    "balance_l", "vmem_limit", "sem0"))
def _yolo_loss_impl(inputs, pos_gidx, pos_box, pos_cls, pos_geo, pos_mask,
                    pos_idx_smem, tgt_smem, img_valid, *, A, attrs, R, H, W, G,
                    blocks_per_split, n_split, max_t, anchors_l, num_classes,
                    box_ratio, obj_ratio, cls_ratio, balance_l, vmem_limit, sem0):
    bs = inputs.shape[0]
    ahw = A * H * W
    lanes = R * 128
    bs_pad = n_split * blocks_per_split * G

    # ---------------- sparse positive-cell path (plain JAX, tiny) -----------
    # TODO(synk): a per-cell single-lane dynamic gather has no efficient Pallas
    # equivalent on TPU, so the <= max_t positives/image are gathered with XLA.
    v = inputs.reshape(bs, A * attrs * H * W).astype(jnp.float32)
    gsel = jnp.take_along_axis(v, pos_gidx, axis=1).reshape(bs, max_t, attrs)
    m = pos_mask                                            # (bs, max_t)
    px = jax.nn.sigmoid(gsel[..., 0]) + pos_geo[..., 0]
    py = jax.nn.sigmoid(gsel[..., 1]) + pos_geo[..., 1]
    pw = jnp.exp(gsel[..., 2]) * pos_geo[..., 2]
    ph = jnp.exp(gsel[..., 3]) * pos_geo[..., 3]
    tx, ty, tw, th = (pos_box[..., 0], pos_box[..., 1], pos_box[..., 2], pos_box[..., 3])
    b1_minx, b1_maxx = px - pw * 0.5, px + pw * 0.5
    b1_miny, b1_maxy = py - ph * 0.5, py + ph * 0.5
    b2_minx, b2_maxx = tx - tw * 0.5, tx + tw * 0.5
    b2_miny, b2_maxy = ty - th * 0.5, ty + th * 0.5
    iw = jnp.maximum(jnp.minimum(b1_maxx, b2_maxx) - jnp.maximum(b1_minx, b2_minx), 0.0)
    ih = jnp.maximum(jnp.minimum(b1_maxy, b2_maxy) - jnp.maximum(b1_miny, b2_miny), 0.0)
    inter = iw * ih
    union = pw * ph + tw * th - inter
    ew = jnp.maximum(jnp.maximum(b1_maxx, b2_maxx) - jnp.minimum(b1_minx, b2_minx), 0.0)
    eh = jnp.maximum(jnp.maximum(b1_maxy, b2_maxy) - jnp.minimum(b1_miny, b2_miny), 0.0)
    enclose = ew * eh
    union_d = jnp.where(m > 0, union, 1.0)        # exact division on the loss path
    enclose_d = jnp.where(m > 0, enclose, 1.0)
    giou = inter / union_d - (enclose - union) / enclose_d
    loc_sum = jnp.sum(m * (1.0 - giou))
    n_obj = jnp.sum(m)

    z_cls = gsel[..., 5:]                                   # (bs, max_t, C)
    onehot = (pos_cls[..., None] == jnp.arange(num_classes)[None, None, :]).astype(jnp.float32)
    p_cls = jnp.clip(jax.nn.sigmoid(z_cls), EPS, 1.0 - EPS)  # torch-style clipped BCE
    bce_cls = -(onehot * jnp.log(p_cls) + (1.0 - onehot) * jnp.log(1.0 - p_cls))
    cls_sum = jnp.sum(m[..., None] * bce_cls)

    # ---------------- dense path (Pallas kernel) ----------------------------
    # Only the 5 box/conf planes are streamed, in bf16, G images per block.
    pred5 = inputs.reshape(bs, A, attrs, H, W)[:, :, :_PLANES]
    pred5 = pred5.transpose(0, 2, 1, 3, 4).reshape(bs, _PLANES, ahw).astype(jnp.bfloat16)
    pred5 = jnp.pad(pred5, ((0, bs_pad - bs), (0, 0), (0, lanes - ahw)))
    pred_blocks = pred5.reshape(bs_pad // G, G * _PLANES, R, 128)

    kernel = _make_kernel(R, G, blocks_per_split, max_t, H, W, ahw, anchors_l)
    grid_spec = pltpu.PrefetchScalarGridSpec(
        num_scalar_prefetch=0,
        grid=(n_split, blocks_per_split),
        in_specs=[
            pl.BlockSpec((1, G * _PLANES, R, 128),
                         lambda c, b: (c * blocks_per_split + b, 0, 0, 0)),
            pl.BlockSpec(memory_space=pltpu.MemorySpace.SMEM),   # positive cell idx
            pl.BlockSpec(memory_space=pltpu.MemorySpace.SMEM),   # GT boxes (ignore)
            pl.BlockSpec(memory_space=pltpu.MemorySpace.SMEM),   # image validity
        ],
        out_specs=pl.BlockSpec((1, 8, 128), lambda c, b: (c, 0, 0)),
        scratch_shapes=[pltpu.VMEM((5, R, 128), jnp.float32)],   # geo, built in-kernel
    )
    sums = pl.pallas_call(
        kernel,
        out_shape=jax.ShapeDtypeStruct((n_split, 8, 128), jnp.float32),
        grid_spec=grid_spec,
        compiler_params=pltpu.CompilerParams(
            dimension_semantics=(sem0, "arbitrary"),
            vmem_limit_bytes=vmem_limit),
    )(pred_blocks, pos_idx_smem, tgt_smem, img_valid)

    s = jnp.sum(sums, axis=(0, 2))                # reduce core-split + lanes -> (8,)
    conf_sum, n_conf = s[0], s[1]

    safe_n = jnp.maximum(n_obj, 1.0)
    loss_pos = (loc_sum / safe_n) * box_ratio + \
               (cls_sum / (safe_n * num_classes)) * cls_ratio
    loss = jnp.where(n_obj > 0, loss_pos, 0.0)
    loss = loss + (conf_sum / jnp.maximum(n_conf, 1.0)) * balance_l * obj_ratio
    return loss


class YOLOLossPallas:
    def __init__(self, anchors, num_classes, input_shape,
                 anchors_mask=((6, 7, 8), (3, 4, 5), (0, 1, 2))):
        self.anchors = np.asarray(anchors, np.float32)
        self.num_classes = num_classes
        self.bbox_attrs = 5 + num_classes
        self.input_shape = input_shape
        self.anchors_mask = [list(m) for m in anchors_mask]
        self.balance = [0.4, 1.0, 4]
        self.box_ratio = 0.05
        self.obj_ratio = 5 * (input_shape[0] * input_shape[1]) / 416 ** 2
        self.cls_ratio = 1 * (num_classes / 80)
        # TODO(synk): only the giou=True branch of the torch module is implemented
        # (the MSE/BCE x,y,w,h + box_loss_scale branch is dead code when giou=True).

    @staticmethod
    def _calc_iou(box_a, box_b):
        a = np.stack([box_a[:, 0] - box_a[:, 2] / 2, box_a[:, 1] - box_a[:, 3] / 2,
                      box_a[:, 0] + box_a[:, 2] / 2, box_a[:, 1] + box_a[:, 3] / 2], 1)
        b = np.stack([box_b[:, 0] - box_b[:, 2] / 2, box_b[:, 1] - box_b[:, 3] / 2,
                      box_b[:, 0] + box_b[:, 2] / 2, box_b[:, 1] + box_b[:, 3] / 2], 1)
        max_xy = np.minimum(a[:, None, 2:], b[None, :, 2:])
        min_xy = np.maximum(a[:, None, :2], b[None, :, :2])
        inter = np.clip(max_xy - min_xy, 0.0, None)
        inter = inter[..., 0] * inter[..., 1]
        area_a = ((a[:, 2] - a[:, 0]) * (a[:, 3] - a[:, 1]))[:, None]
        area_b = ((b[:, 2] - b[:, 0]) * (b[:, 3] - b[:, 1]))[None, :]
        return inter / (area_a + area_b - inter)

    def __call__(self, l, inputs, targets):
        inputs = jnp.asarray(inputs)
        bs, _, in_h, in_w = inputs.shape
        A = len(self.anchors_mask[l])
        attrs = self.bbox_attrs
        ahw = A * in_h * in_w
        r0 = (ahw + 127) // 128
        R = ((r0 + 7) // 8) * 8                  # sublane-padded row count

        stride_h = self.input_shape[0] / in_h
        stride_w = self.input_shape[1] / in_w
        scaled_anchors = np.stack(
            [self.anchors[:, 0] / stride_w, self.anchors[:, 1] / stride_h], 1
        ).astype(np.float32)
        sa_l = scaled_anchors[self.anchors_mask[l]]
        anchors_l = tuple((float(w), float(h)) for w, h in sa_l)
        anchor_shapes = np.concatenate(
            [np.zeros((len(scaled_anchors), 2), np.float32), scaled_anchors], 1)

        # ---- host-side target assignment (mirrors torch get_target) --------
        tb_all, positives = [], []
        nt_max = 0
        for b in range(bs):
            tb = np.asarray(targets[b], np.float32).reshape(-1, 5) if len(targets[b]) \
                else np.zeros((0, 5), np.float32)
            bt = np.zeros_like(tb)
            if tb.shape[0]:
                bt[:, [0, 2]] = tb[:, [0, 2]] * in_w
                bt[:, [1, 3]] = tb[:, [1, 3]] * in_h
                bt[:, 4] = tb[:, 4]
            tb_all.append(bt)
            nt_max = max(nt_max, bt.shape[0])
            pos = {}
            if bt.shape[0]:
                gt_box = np.concatenate(
                    [np.zeros((bt.shape[0], 2), np.float32), bt[:, 2:4]], 1)
                best_ns = np.argmax(self._calc_iou(gt_box, anchor_shapes), axis=-1)
                for t, best_n in enumerate(best_ns):
                    if best_n not in self.anchors_mask[l]:
                        continue
                    k = self.anchors_mask[l].index(best_n)
                    i = min(max(int(np.floor(bt[t, 0])), 0), in_w - 1)
                    j = min(max(int(np.floor(bt[t, 1])), 0), in_h - 1)
                    c = int(bt[t, 4])
                    # last write wins on cell collisions (torch's multi-hot
                    # accumulation of earlier classes in that edge case is dropped)
                    pos[k * in_h * in_w + j * in_w + i] = \
                        (bt[t, 0], bt[t, 1], bt[t, 2], bt[t, 3], c, k, i, j)
            positives.append(pos)

        # power-of-two bucketing to limit recompiles
        max_t = 4 if nt_max == 0 else max(4, 1 << (int(nt_max) - 1).bit_length())

        # ---- generation-aware launch geometry -------------------------------
        n_tc, vmem_cap = _device_info()
        n_split = 2 if (n_tc >= 2 and bs >= 2) else 1
        bs_per_split = -(-bs // n_split)
        per_img_bytes = _PLANES * R * 128 * 2                    # bf16 planes
        g_budget = max(1, int(0.25 * vmem_cap) // max(1, 2 * per_img_bytes))
        G = max(1, min(bs_per_split, g_budget, 8))
        blocks_per_split = -(-bs_per_split // G)
        bs_pad = n_split * blocks_per_split * G

        need = 2 * G * per_img_bytes + 5 * R * 128 * 4 + n_split * 8 * 128 * 4 + (2 << 20)
        vmem_limit = int(min(max(2 * need, 32 << 20), int(0.75 * vmem_cap)))
        vmem_limit = int(max(vmem_limit, need))

        sem0 = "arbitrary"
        if n_split == 2:
            sem0 = getattr(pltpu, "CORE_PARALLEL", "parallel")

        # ---- compact per-positive / per-GT tables (tiny H2D) ----------------
        pos_idx = np.full((bs_pad * max_t,), -1.0, np.float32)
        tgt = np.zeros((bs_pad * max_t * 4,), np.float32)
        img_valid = np.zeros((bs_pad,), np.float32)
        img_valid[:bs] = 1.0
        pos_gidx = np.zeros((bs, max_t * attrs), np.int32)
        pos_box = np.zeros((bs, max_t, 4), np.float32)
        pos_cls = np.full((bs, max_t), -1, np.int32)
        pos_geo = np.zeros((bs, max_t, 4), np.float32)
        pos_mask = np.zeros((bs, max_t), np.float32)
        attr_off = np.arange(attrs, dtype=np.int32) * in_h * in_w
        for b in range(bs):
            bt = tb_all[b]
            if bt.shape[0]:
                tgt[b * max_t * 4: b * max_t * 4 + bt.shape[0] * 4] = bt[:, :4].reshape(-1)
            for n, (cell, (x, y, w, h, c, k, i, j)) in enumerate(positives[b].items()):
                pos_idx[b * max_t + n] = float(cell)
                base = k * attrs * in_h * in_w + j * in_w + i
                pos_gidx[b, n * attrs:(n + 1) * attrs] = base + attr_off
                pos_box[b, n] = (x, y, w, h)
                pos_cls[b, n] = c
                pos_geo[b, n] = (float(i), float(j), float(sa_l[k, 0]), float(sa_l[k, 1]))
                pos_mask[b, n] = 1.0

        kwargs = dict(A=A, attrs=attrs, R=R, H=in_h, W=in_w, G=G,
                      blocks_per_split=blocks_per_split, n_split=n_split,
                      max_t=max_t, anchors_l=anchors_l,
                      num_classes=self.num_classes, box_ratio=float(self.box_ratio),
                      obj_ratio=float(self.obj_ratio), cls_ratio=float(self.cls_ratio),
                      balance_l=float(self.balance[l]), vmem_limit=vmem_limit)
        args = (inputs, jnp.asarray(pos_gidx), jnp.asarray(pos_box),
                jnp.asarray(pos_cls), jnp.asarray(pos_geo), jnp.asarray(pos_mask),
                jnp.asarray(pos_idx), jnp.asarray(tgt), jnp.asarray(img_valid))
        try:
            return _yolo_loss_impl(*args, sem0=sem0, **kwargs)
        except Exception:
            if sem0 not in ("arbitrary", "parallel"):
                return _yolo_loss_impl(*args, sem0="parallel", **kwargs)
            raise


if __name__ == "__main__":
    key = jax.random.PRNGKey(0)
    bs, num_classes, in_hw = 2, 4, 16
    input_shape = (64, 64)
    A = 3
    attrs = 5 + num_classes
    l = 1  # anchors_mask[1] = [3, 4, 5]
    anchors = [(6, 8), (10, 14), (16, 12), (14, 24), (24, 20),
               (22, 40), (36, 30), (44, 52), (60, 64)]

    k1, k2, k3, k4 = jax.random.split(key, 4)
    x_in = jax.random.normal(k1, (bs, A * attrs, in_hw, in_hw), jnp.float32)
    xy = jax.random.uniform(k2, (bs, 2, 2), minval=0.2, maxval=0.8)
    wh = jax.random.uniform(k3, (bs, 2, 2), minval=0.1, maxval=0.45)
    cls = jax.random.randint(k4, (bs, 2, 1), 0, num_classes).astype(jnp.float32)
    targets_np = np.asarray(jnp.concatenate([xy, wh, cls], axis=-1))
    targets = [targets_np[b] for b in range(bs)]

    loss_fn = YOLOLossPallas(anchors, num_classes, input_shape)
    loss = loss_fn(l, x_in, targets)
    loss = jax.block_until_ready(loss)
    assert np.isfinite(float(loss))
    print("KERNEL_OK")
</pallas_src>

<mosaic_0001>
module attributes {stable_mosaic.version = 11 : i64} {
  func.func @kernel(%arg0: i32, %arg1: i32, %arg2: memref<1x10x8x128xbf16, #tpu.memory_space<vmem>>, %arg3: memref<8xf32, #tpu.memory_space<smem>>, %arg4: memref<32xf32, #tpu.memory_space<smem>>, %arg5: memref<2xf32, #tpu.memory_space<smem>>, %arg6: memref<1x8x128xf32, #tpu.memory_space<vmem>>, %arg7: memref<5x8x128xf32, #tpu.memory_space<vmem>>) attributes {dimension_semantics = [#tpu.dimension_semantics<arbitrary>, #tpu.dimension_semantics<arbitrary>], iteration_bounds = array<i64: 1, 1>, scalar_prefetch = 0 : i64, scratch_operands = 1 : i64, tpu.core_type = #tpu.core_type<tc>, window_params = [{transform_indices = @transform_0, window_bounds = array<i64: 1, 10, 8, 128>}, {transform_indices = @transform_1, window_bounds = array<i64: 8>}, {transform_indices = @transform_2, window_bounds = array<i64: 32>}, {transform_indices = @transform_3, window_bounds = array<i64: 2>}, {transform_indices = @transform_4, window_bounds = array<i64: 1, 8, 128>}]} {
    %c0_i32 = arith.constant 0 : i32
    %0 = arith.cmpi eq, %arg1, %c0_i32 : i32
    %1 = arith.extui %0 : i1 to i32
    %c0_i32_0 = arith.constant 0 : i32
    %2 = arith.cmpi ne, %1, %c0_i32_0 : i32
    scf.if %2 {
      %cst_222 = arith.constant 0.000000e+00 : f32
      %653 = vector.broadcast %cst_222 : f32 to vector<1x8x128xf32>
      %c0_223 = arith.constant 0 : index
      %c0_224 = arith.constant 0 : index
      %c0_225 = arith.constant 0 : index
      %654 = vector.load %arg6[%c0_223, %c0_224, %c0_225] : memref<1x8x128xf32, #tpu.memory_space<vmem>>, vector<1x8x128xf32>
      tpu.vector_store %arg6[%c0_223, %c0_224, %c0_225], %653 {strides = array<i32>} : memref<1x8x128xf32, #tpu.memory_space<vmem>>, vector<1x8x128xf32>,
      %655 = tpu.iota {dimensions = array<i32: 0>} : vector<8x128xi32>
      %656 = tpu.iota {dimensions = array<i32: 1>} : vector<8x128xi32>
      %c128_i32 = arith.constant 128 : i32
      %657 = vector.broadcast %c128_i32 : i32 to vector<8x128xi32>
      %658 = arith.muli %655, %657 : vector<8x128xi32>
      %659 = arith.addi %658, %656 : vector<8x128xi32>
      %660 = arith.sitofp %659 : vector<8x128xi32> to vector<8x128xf32>
      %cst_226 = arith.constant 2.560000e+02 : f32
      %661 = vector.broadcast %cst_226 : f32 to vector<8x128xf32>
      %662 = arith.divf %660, %661 : vector<8x128xf32>
      %663 = math.floor %662 : vector<8x128xf32>
      %cst_227 = arith.constant 2.560000e+02 : f32
      %664 = vector.broadcast %cst_227 : f32 to vector<8x128xf32>
      %665 = arith.mulf %663, %664 : vector<8x128xf32>
      %666 = arith.subf %660, %665 : vector<8x128xf32>
      %cst_228 = arith.constant 1.600000e+01 : f32
      %667 = vector.broadcast %cst_228 : f32 to vector<8x128xf32>
      %668 = arith.divf %666, %667 : vector<8x128xf32>
      %669 = math.floor %668 : vector<8x128xf32>
      %cst_229 = arith.constant 1.600000e+01 : f32
      %670 = vector.broadcast %cst_229 : f32 to vector<8x128xf32>
      %671 = arith.mulf %669, %670 : vector<8x128xf32>
      %672 = arith.subf %666, %671 : vector<8x128xf32>
      %cst_230 = arith.constant 0.000000e+00 : f32
      %673 = vector.broadcast %cst_230 : f32 to vector<8x128xf32>
      %cst_231 = arith.constant 0.000000e+00 : f32
      %674 = vector.broadcast %cst_231 : f32 to vector<8x128xf32>
      %cst_232 = arith.constant 0.000000e+00 : f32
      %675 = vector.broadcast %cst_232 : f32 to vector<8x128xf32>
      %676 = arith.cmpf oeq, %663, %675 : vector<8x128xf32>
      %cst_233 = arith.constant 3.500000e+00 : f32
      %677 = vector.broadcast %cst_233 : f32 to vector<8x128xf32>
      %678 = arith.select %676, %677, %673 : vector<8x128xi1>, vector<8x128xf32>
      %cst_234 = arith.constant 6.000000e+00 : f32
      %679 = vector.broadcast %cst_234 : f32 to vector<8x128xf32>
      %680 = arith.select %676, %679, %674 : vector<8x128xi1>, vector<8x128xf32>
      %cst_235 = arith.constant 1.000000e+00 : f32
      %681 = vector.broadcast %cst_235 : f32 to vector<8x128xf32>
      %682 = arith.cmpf oeq, %663, %681 : vector<8x128xf32>
      %cst_236 = arith.constant 6.000000e+00 : f32
      %683 = vector.broadcast %cst_236 : f32 to vector<8x128xf32>
      %684 = arith.select %682, %683, %678 : vector<8x128xi1>, vector<8x128xf32>
      %cst_237 = arith.constant 5.000000e+00 : f32
      %685 = vector.broadcast %cst_237 : f32 to vector<8x128xf32>
      %686 = arith.select %682, %685, %680 : vector<8x128xi1>, vector<8x128xf32>
      %cst_238 = arith.constant 2.000000e+00 : f32
      %687 = vector.broadcast %cst_238 : f32 to vector<8x128xf32>
      %688 = arith.cmpf oeq, %663, %687 : vector<8x128xf32>
      %cst_239 = arith.constant 5.500000e+00 : f32
      %689 = vector.broadcast %cst_239 : f32 to vector<8x128xf32>
      %690 = arith.select %688, %689, %684 : vector<8x128xi1>, vector<8x128xf32>
      %cst_240 = arith.constant 1.000000e+01 : f32
      %691 = vector.broadcast %cst_240 : f32 to vector<8x128xf32>
      %692 = arith.select %688, %691, %686 : vector<8x128xi1>, vector<8x128xf32>
      %c0_241 = arith.constant 0 : index
      %c0_242 = arith.constant 0 : index
      %c0_243 = arith.constant 0 : index
      %693 = vector.load %arg7[%c0_241, %c0_242, %c0_243] : memref<5x8x128xf32, #tpu.memory_space<vmem>>, vector<1x8x128xf32>
      %694 = vector.shape_cast %693 : vector<1x8x128xf32> to vector<8x128xf32>
      %695 = vector.shape_cast %672 : vector<8x128xf32> to vector<1x8x128xf32>
      tpu.vector_store %arg7[%c0_241, %c0_242, %c0_243], %695 {strides = array<i32>} : memref<5x8x128xf32, #tpu.memory_space<vmem>>, vector<1x8x128xf32>,
      %c1_244 = arith.constant 1 : index
      %c0_245 = arith.constant 0 : index
      %c0_246 = arith.constant 0 : index
      %696 = vector.load %arg7[%c1_244, %c0_245, %c0_246] : memref<5x8x128xf32, #tpu.memory_space<vmem>>, vector<1x8x128xf32>
      %697 = vector.shape_cast %696 : vector<1x8x128xf32> to vector<8x128xf32>
      %698 = vector.shape_cast %669 : vector<8x128xf32> to vector<1x8x128xf32>
      tpu.vector_store %arg7[%c1_244, %c0_245, %c0_246], %698 {strides = array<i32>} : memref<5x8x128xf32, #tpu.memory_space<vmem>>, vector<1x8x128xf32>,
      %c2_247 = arith.constant 2 : index
      %c0_248 = arith.constant 0 : index
      %c0_249 = arith.constant 0 : index
      %699 = vector.load %arg7[%c2_247, %c0_248, %c0_249] : memref<5x8x128xf32, #tpu.memory_space<vmem>>, vector<1x8x128xf32>
      %700 = vector.shape_cast %699 : vector<1x8x128xf32> to vector<8x128xf32>
      %701 = vector.shape_cast %690 : vector<8x128xf32> to vector<1x8x128xf32>
      tpu.vector_store %arg7[%c2_247, %c0_248, %c0_249], %701 {strides = array<i32>} : memref<5x8x128xf32, #tpu.memory_space<vmem>>, vector<1x8x128xf32>,
      %c3_250 = arith.constant 3 : index
      %c0_251 = arith.constant 0 : index
      %c0_252 = arith.constant 0 : index
      %702 = vector.load %arg7[%c3_250, %c0_251, %c0_252] : memref<5x8x128xf32, #tpu.memory_space<vmem>>, vector<1x8x128xf32>
      %703 = vector.shape_cast %702 : vector<1x8x128xf32> to vector<8x128xf32>
      %704 = vector.shape_cast %692 : vector<8x128xf32> to vector<1x8x128xf32>
      tpu.vector_store %arg7[%c3_250, %c0_251, %c0_252], %704 {strides = array<i32>} : memref<5x8x128xf32, #tpu.memory_space<vmem>>, vector<1x8x128xf32>,
      %c4_253 = arith.constant 4 : index
      %c0_254 = arith.constant 0 : index
      %c0_255 = arith.constant 0 : index
      %705 = vector.load %arg7[%c4_253, %c0_254, %c0_255] : memref<5x8x128xf32, #tpu.memory_space<vmem>>, vector<1x8x128xf32>
      %706 = vector.shape_cast %705 : vector<1x8x128xf32> to vector<8x128xf32>
      %707 = vector.shape_cast %660 : vector<8x128xf32> to vector<1x8x128xf32>
      tpu.vector_store %arg7[%c4_253, %c0_254, %c0_255], %707 {strides = array<i32>} : memref<5x8x128xf32, #tpu.memory_space<vmem>>, vector<1x8x128xf32>,
    } else {
    }
    %c0 = arith.constant 0 : index
    %c0_1 = arith.constant 0 : index
    %c0_2 = arith.constant 0 : index
    %3 = vector.load %arg7[%c0, %c0_1, %c0_2] : memref<5x8x128xf32, #tpu.memory_space<vmem>>, vector<1x8x128xf32>
    %4 = vector.shape_cast %3 : vector<1x8x128xf32> to vector<8x128xf32>
    %c1 = arith.constant 1 : index
    %c0_3 = arith.constant 0 : index
    %c0_4 = arith.constant 0 : index
    %5 = vector.load %arg7[%c1, %c0_3, %c0_4] : memref<5x8x128xf32, #tpu.memory_space<vmem>>, vector<1x8x128xf32>
    %6 = vector.shape_cast %5 : vector<1x8x128xf32> to vector<8x128xf32>
    %c2 = arith.constant 2 : index
    %c0_5 = arith.constant 0 : index
    %c0_6 = arith.constant 0 : index
    %7 = vector.load %arg7[%c2, %c0_5, %c0_6] : memref<5x8x128xf32, #tpu.memory_space<vmem>>, vector<1x8x128xf32>
    %8 = vector.shape_cast %7 : vector<1x8x128xf32> to vector<8x128xf32>
    %c3 = arith.constant 3 : index
    %c0_7 = arith.constant 0 : index
    %c0_8 = arith.constant 0 : index
    %9 = vector.load %arg7[%c3, %c0_7, %c0_8] : memref<5x8x128xf32, #tpu.memory_space<vmem>>, vector<1x8x128xf32>
    %10 = vector.shape_cast %9 : vector<1x8x128xf32> to vector<8x128xf32>
    %c4 = arith.constant 4 : index
    %c0_9 = arith.constant 0 : index
    %c0_10 = arith.constant 0 : index
    %11 = vector.load %arg7[%c4, %c0_9, %c0_10] : memref<5x8x128xf32, #tpu.memory_space<vmem>>, vector<1x8x128xf32>
    %12 = vector.shape_cast %11 : vector<1x8x128xf32> to vector<8x128xf32>
    %cst = arith.constant 7.680000e+02 : f32
    %13 = vector.broadcast %cst : f32 to vector<8x128xf32>
    %14 = arith.cmpf olt, %12, %13 : vector<8x128xf32>
    %cst_11 = arith.constant 0.000000e+00 : f32
    %15 = vector.broadcast %cst_11 : f32 to vector<1x128xf32>
    %cst_12 = arith.constant 0.000000e+00 : f32
    %16 = vector.broadcast %cst_12 : f32 to vector<1x128xf32>
    %c1_i32 = arith.constant 1 : i32
    %17 = arith.muli %arg0, %c1_i32 : i32
    %18 = arith.addi %17, %arg1 : i32
    %c2_i32 = arith.constant 2 : i32
    %19 = arith.muli %18, %c2_i32 : i32
    %c0_i32_13 = arith.constant 0 : i32
    %20 = arith.addi %19, %c0_i32_13 : i32
    %c0_14 = arith.constant 0 : index
    %c0_15 = arith.constant 0 : index
    %c0_16 = arith.constant 0 : index
    %c0_17 = arith.constant 0 : index
    %21 = vector.load %arg2[%c0_14, %c0_15, %c0_16, %c0_17] : memref<1x10x8x128xbf16, #tpu.memory_space<vmem>>, vector<1x1x8x128xbf16>
    %22 = vector.shape_cast %21 : vector<1x1x8x128xbf16> to vector<8x128xbf16>
    %23 = arith.extf %22 : vector<8x128xbf16> to vector<8x128xf32>
    %24 = arith.negf %23 : vector<8x128xf32>
    %25 = math.exp %24 : vector<8x128xf32>
    %cst_18 = arith.constant 1.000000e+00 : f32
    %26 = vector.broadcast %cst_18 : f32 to vector<8x128xf32>
    %27 = arith.addf %26, %25 : vector<8x128xf32>
    %28 = arith.divf %26, %27 : vector<8x128xf32>
    %c0_19 = arith.constant 0 : index
    %c1_20 = arith.constant 1 : index
    %c0_21 = arith.constant 0 : index
    %c0_22 = arith.constant 0 : index
    %29 = vector.load %arg2[%c0_19, %c1_20, %c0_21, %c0_22] : memref<1x10x8x128xbf16, #tpu.memory_space<vmem>>, vector<1x1x8x128xbf16>
    %30 = vector.shape_cast %29 : vector<1x1x8x128xbf16> to vector<8x128xbf16>
    %31 = arith.extf %30 : vector<8x128xbf16> to vector<8x128xf32>
    %32 = arith.negf %31 : vector<8x128xf32>
    %33 = math.exp %32 : vector<8x128xf32>
    %cst_23 = arith.constant 1.000000e+00 : f32
    %34 = vector.broadcast %cst_23 : f32 to vector<8x128xf32>
    %35 = arith.addf %34, %33 : vector<8x128xf32>
    %36 = arith.divf %34, %35 : vector<8x128xf32>
    %c0_24 = arith.constant 0 : index
    %c2_25 = arith.constant 2 : index
    %c0_26 = arith.constant 0 : index
    %c0_27 = arith.constant 0 : index
    %37 = vector.load %arg2[%c0_24, %c2_25, %c0_26, %c0_27] : memref<1x10x8x128xbf16, #tpu.memory_space<vmem>>, vector<1x1x8x128xbf16>
    %38 = vector.shape_cast %37 : vector<1x1x8x128xbf16> to vector<8x128xbf16>
    %39 = arith.extf %38 : vector<8x128xbf16> to vector<8x128xf32>
    %40 = math.exp %39 : vector<8x128xf32>
    %41 = arith.mulf %40, %8 : vector<8x128xf32>
    %c0_28 = arith.constant 0 : index
    %c3_29 = arith.constant 3 : index
    %c0_30 = arith.constant 0 : index
    %c0_31 = arith.constant 0 : index
    %42 = vector.load %arg2[%c0_28, %c3_29, %c0_30, %c0_31] : memref<1x10x8x128xbf16, #tpu.memory_space<vmem>>, vector<1x1x8x128xbf16>
    %43 = vector.shape_cast %42 : vector<1x1x8x128xbf16> to vector<8x128xbf16>
    %44 = arith.extf %43 : vector<8x128xbf16> to vector<8x128xf32>
    %45 = math.exp %44 : vector<8x128xf32>
    %46 = arith.mulf %45, %10 : vector<8x128xf32>
    %c0_32 = arith.constant 0 : index
    %c4_33 = arith.constant 4 : index
    %c0_34 = arith.constant 0 : index
    %c0_35 = arith.constant 0 : index
    %47 = vector.load %arg2[%c0_32, %c4_33, %c0_34, %c0_35] : memref<1x10x8x128xbf16, #tpu.memory_space<vmem>>, vector<1x1x8x128xbf16>
    %48 = vector.shape_cast %47 : vector<1x1x8x128xbf16> to vector<8x128xbf16>
    %49 = arith.extf %48 : vector<8x128xbf16> to vector<8x128xf32>
    %50 = arith.addf %28, %4 : vector<8x128xf32>
    %51 = arith.addf %36, %6 : vector<8x128xf32>
    %cst_36 = arith.constant 5.000000e-01 : f32
    %52 = vector.broadcast %cst_36 : f32 to vector<8x128xf32>
    %53 = arith.mulf %41, %52 : vector<8x128xf32>
    %cst_37 = arith.constant 5.000000e-01 : f32
    %54 = vector.broadcast %cst_37 : f32 to vector<8x128xf32>
    %55 = arith.mulf %46, %54 : vector<8x128xf32>
    %56 = arith.subf %50, %53 : vector<8x128xf32>
    %57 = arith.addf %50, %53 : vector<8x128xf32>
    %58 = arith.subf %51, %55 : vector<8x128xf32>
    %59 = arith.addf %51, %55 : vector<8x128xf32>
    %60 = arith.mulf %41, %46 : vector<8x128xf32>
    %c4_i32 = arith.constant 4 : i32
    %61 = arith.muli %20, %c4_i32 : i32
    %cst_38 = arith.constant 0.000000e+00 : f32
    %62 = vector.broadcast %cst_38 : f32 to vector<8x128xf32>
    %c0_i32_39 = arith.constant 0 : i32
    %63 = arith.addi %61, %c0_i32_39 : i32
    %64 = arith.index_cast %63 : i32 to index
    %65 = memref.load %arg3[%64] : memref<8xf32, #tpu.memory_space<smem>>
    %66 = vector.broadcast %65 : f32 to vector<8x128xf32>
    %67 = arith.cmpf oeq, %12, %66 : vector<8x128xf32>
    %68 = arith.extui %67 : vector<8x128xi1> to vector<8x128xi32>
    %69 = arith.sitofp %68 : vector<8x128xi32> to vector<8x128xf32>
    %70 = arith.maximumf %62, %69 : vector<8x128xf32>
    %c1_i32_40 = arith.constant 1 : i32
    %71 = arith.addi %61, %c1_i32_40 : i32
    %72 = arith.index_cast %71 : i32 to index
    %73 = memref.load %arg3[%72] : memref<8xf32, #tpu.memory_space<smem>>
    %74 = vector.broadcast %73 : f32 to vector<8x128xf32>
    %75 = arith.cmpf oeq, %12, %74 : vector<8x128xf32>
    %76 = arith.extui %75 : vector<8x128xi1> to vector<8x128xi32>
    %77 = arith.sitofp %76 : vector<8x128xi32> to vector<8x128xf32>
    %78 = arith.maximumf %70, %77 : vector<8x128xf32>
    %c2_i32_41 = arith.constant 2 : i32
    %79 = arith.addi %61, %c2_i32_41 : i32
    %80 = arith.index_cast %79 : i32 to index
    %81 = memref.load %arg3[%80] : memref<8xf32, #tpu.memory_space<smem>>
    %82 = vector.broadcast %81 : f32 to vector<8x128xf32>
    %83 = arith.cmpf oeq, %12, %82 : vector<8x128xf32>
    %84 = arith.extui %83 : vector<8x128xi1> to vector<8x128xi32>
    %85 = arith.sitofp %84 : vector<8x128xi32> to vector<8x128xf32>
    %86 = arith.maximumf %78, %85 : vector<8x128xf32>
    %c3_i32 = arith.constant 3 : i32
    %87 = arith.addi %61, %c3_i32 : i32
    %88 = arith.index_cast %87 : i32 to index
    %89 = memref.load %arg3[%88] : memref<8xf32, #tpu.memory_space<smem>>
    %90 = vector.broadcast %89 : f32 to vector<8x128xf32>
    %91 = arith.cmpf oeq, %12, %90 : vector<8x128xf32>
    %92 = arith.extui %91 : vector<8x128xi1> to vector<8x128xi32>
    %93 = arith.sitofp %92 : vector<8x128xi32> to vector<8x128xf32>
    %94 = arith.maximumf %86, %93 : vector<8x128xf32>
    %cst_42 = arith.constant 5.000000e-01 : f32
    %95 = vector.broadcast %cst_42 : f32 to vector<8x128xf32>
    %96 = arith.cmpf ogt, %94, %95 : vector<8x128xf32>
    %c4_i32_43 = arith.constant 4 : i32
    %97 = arith.muli %20, %c4_i32_43 : i32
    %c4_i32_44 = arith.constant 4 : i32
    %98 = arith.muli %97, %c4_i32_44 : i32
    %cst_45 = arith.constant 0.000000e+00 : f32
    %99 = vector.broadcast %cst_45 : f32 to vector<8x128xf32>
    %c0_i32_46 = arith.constant 0 : i32
    %100 = arith.addi %98, %c0_i32_46 : i32
    %c0_i32_47 = arith.constant 0 : i32
    %101 = arith.addi %100, %c0_i32_47 : i32
    %102 = arith.index_cast %101 : i32 to index
    %103 = memref.load %arg4[%102] : memref<32xf32, #tpu.memory_space<smem>>
    %c0_i32_48 = arith.constant 0 : i32
    %104 = arith.addi %98, %c0_i32_48 : i32
    %c1_i32_49 = arith.constant 1 : i32
    %105 = arith.addi %104, %c1_i32_49 : i32
    %106 = arith.index_cast %105 : i32 to index
    %107 = memref.load %arg4[%106] : memref<32xf32, #tpu.memory_space<smem>>
    %c0_i32_50 = arith.constant 0 : i32
    %108 = arith.addi %98, %c0_i32_50 : i32
    %c2_i32_51 = arith.constant 2 : i32
    %109 = arith.addi %108, %c2_i32_51 : i32
    %110 = arith.index_cast %109 : i32 to index
    %111 = memref.load %arg4[%110] : memref<32xf32, #tpu.memory_space<smem>>
    %c0_i32_52 = arith.constant 0 : i32
    %112 = arith.addi %98, %c0_i32_52 : i32
    %c3_i32_53 = arith.constant 3 : i32
    %113 = arith.addi %112, %c3_i32_53 : i32
    %114 = arith.index_cast %113 : i32 to index
    %115 = memref.load %arg4[%114] : memref<32xf32, #tpu.memory_space<smem>>
    %cst_54 = arith.constant 5.000000e-01 : f32
    %116 = arith.mulf %111, %cst_54 : f32
    %117 = arith.subf %103, %116 : f32
    %cst_55 = arith.constant 5.000000e-01 : f32
    %118 = arith.mulf %111, %cst_55 : f32
    %119 = arith.addf %103, %118 : f32
    %cst_56 = arith.constant 5.000000e-01 : f32
    %120 = arith.mulf %115, %cst_56 : f32
    %121 = arith.subf %107, %120 : f32
    %cst_57 = arith.constant 5.000000e-01 : f32
    %122 = arith.mulf %115, %cst_57 : f32
    %123 = arith.addf %107, %122 : f32
    %124 = vector.broadcast %119 : f32 to vector<8x128xf32>
    %125 = arith.minimumf %124, %57 : vector<8x128xf32>
    %126 = vector.broadcast %117 : f32 to vector<8x128xf32>
    %127 = arith.maximumf %126, %56 : vector<8x128xf32>
    %128 = arith.subf %125, %127 : vector<8x128xf32>
    %cst_58 = arith.constant 0.000000e+00 : f32
    %129 = vector.broadcast %cst_58 : f32 to vector<8x128xf32>
    %130 = arith.maximumf %128, %129 : vector<8x128xf32>
    %131 = vector.broadcast %123 : f32 to vector<8x128xf32>
    %132 = arith.minimumf %131, %59 : vector<8x128xf32>
    %133 = vector.broadcast %121 : f32 to vector<8x128xf32>
    %134 = arith.maximumf %133, %58 : vector<8x128xf32>
    %135 = arith.subf %132, %134 : vector<8x128xf32>
    %cst_59 = arith.constant 0.000000e+00 : f32
    %136 = vector.broadcast %cst_59 : f32 to vector<8x128xf32>
    %137 = arith.maximumf %135, %136 : vector<8x128xf32>
    %138 = arith.mulf %130, %137 : vector<8x128xf32>
    %139 = arith.mulf %111, %115 : f32
    %140 = vector.broadcast %139 : f32 to vector<8x128xf32>
    %141 = arith.addf %140, %60 : vector<8x128xf32>
    %142 = arith.subf %141, %138 : vector<8x128xf32>
    %cst_60 = arith.constant 1.000000e-07 : f32
    %143 = vector.broadcast %cst_60 : f32 to vector<8x128xf32>
    %144 = arith.addf %142, %143 : vector<8x128xf32>
    %145 = tpu.reciprocal %144 {approx = true} : vector<8x128xf32> -> vector<8x128xf32>
    %146 = arith.mulf %138, %145 : vector<8x128xf32>
    %147 = arith.maximumf %99, %146 : vector<8x128xf32>
    %c4_i32_61 = arith.constant 4 : i32
    %148 = arith.addi %98, %c4_i32_61 : i32
    %c0_i32_62 = arith.constant 0 : i32
    %149 = arith.addi %148, %c0_i32_62 : i32
    %150 = arith.index_cast %149 : i32 to index
    %151 = memref.load %arg4[%150] : memref<32xf32, #tpu.memory_space<smem>>
    %c4_i32_63 = arith.constant 4 : i32
    %152 = arith.addi %98, %c4_i32_63 : i32
    %c1_i32_64 = arith.constant 1 : i32
    %153 = arith.addi %152, %c1_i32_64 : i32
    %154 = arith.index_cast %153 : i32 to index
    %155 = memref.load %arg4[%154] : memref<32xf32, #tpu.memory_space<smem>>
    %c4_i32_65 = arith.constant 4 : i32
    %156 = arith.addi %98, %c4_i32_65 : i32
    %c2_i32_66 = arith.constant 2 : i32
    %157 = arith.addi %156, %c2_i32_66 : i32
    %158 = arith.index_cast %157 : i32 to index
    %159 = memref.load %arg4[%158] : memref<32xf32, #tpu.memory_space<smem>>
    %c4_i32_67 = arith.constant 4 : i32
    %160 = arith.addi %98, %c4_i32_67 : i32
    %c3_i32_68 = arith.constant 3 : i32
    %161 = arith.addi %160, %c3_i32_68 : i32
    %162 = arith.index_cast %161 : i32 to index
    %163 = memref.load %arg4[%162] : memref<32xf32, #tpu.memory_space<smem>>
    %cst_69 = arith.constant 5.000000e-01 : f32
    %164 = arith.mulf %159, %cst_69 : f32
    %165 = arith.subf %151, %164 : f32
    %cst_70 = arith.constant 5.000000e-01 : f32
    %166 = arith.mulf %159, %cst_70 : f32
    %167 = arith.addf %151, %166 : f32
    %cst_71 = arith.constant 5.000000e-01 : f32
    %168 = arith.mulf %163, %cst_71 : f32
    %169 = arith.subf %155, %168 : f32
    %cst_72 = arith.constant 5.000000e-01 : f32
    %170 = arith.mulf %163, %cst_72 : f32
    %171 = arith.addf %155, %170 : f32
    %172 = vector.broadcast %167 : f32 to vector<8x128xf32>
    %173 = arith.minimumf %172, %57 : vector<8x128xf32>
    %174 = vector.broadcast %165 : f32 to vector<8x128xf32>
    %175 = arith.maximumf %174, %56 : vector<8x128xf32>
    %176 = arith.subf %173, %175 : vector<8x128xf32>
    %cst_73 = arith.constant 0.000000e+00 : f32
    %177 = vector.broadcast %cst_73 : f32 to vector<8x128xf32>
    %178 = arith.maximumf %176, %177 : vector<8x128xf32>
    %179 = vector.broadcast %171 : f32 to vector<8x128xf32>
    %180 = arith.minimumf %179, %59 : vector<8x128xf32>
    %181 = vector.broadcast %169 : f32 to vector<8x128xf32>
    %182 = arith.maximumf %181, %58 : vector<8x128xf32>
    %183 = arith.subf %180, %182 : vector<8x128xf32>
    %cst_74 = arith.constant 0.000000e+00 : f32
    %184 = vector.broadcast %cst_74 : f32 to vector<8x128xf32>
    %185 = arith.maximumf %183, %184 : vector<8x128xf32>
    %186 = arith.mulf %178, %185 : vector<8x128xf32>
    %187 = arith.mulf %159, %163 : f32
    %188 = vector.broadcast %187 : f32 to vector<8x128xf32>
    %189 = arith.addf %188, %60 : vector<8x128xf32>
    %190 = arith.subf %189, %186 : vector<8x128xf32>
    %cst_75 = arith.constant 1.000000e-07 : f32
    %191 = vector.broadcast %cst_75 : f32 to vector<8x128xf32>
    %192 = arith.addf %190, %191 : vector<8x128xf32>
    %193 = tpu.reciprocal %192 {approx = true} : vector<8x128xf32> -> vector<8x128xf32>
    %194 = arith.mulf %186, %193 : vector<8x128xf32>
    %195 = arith.maximumf %147, %194 : vector<8x128xf32>
    %c8_i32 = arith.constant 8 : i32
    %196 = arith.addi %98, %c8_i32 : i32
    %c0_i32_76 = arith.constant 0 : i32
    %197 = arith.addi %196, %c0_i32_76 : i32
    %198 = arith.index_cast %197 : i32 to index
    %199 = memref.load %arg4[%198] : memref<32xf32, #tpu.memory_space<smem>>
    %c8_i32_77 = arith.constant 8 : i32
    %200 = arith.addi %98, %c8_i32_77 : i32
    %c1_i32_78 = arith.constant 1 : i32
    %201 = arith.addi %200, %c1_i32_78 : i32
    %202 = arith.index_cast %201 : i32 to index
    %203 = memref.load %arg4[%202] : memref<32xf32, #tpu.memory_space<smem>>
    %c8_i32_79 = arith.constant 8 : i32
    %204 = arith.addi %98, %c8_i32_79 : i32
    %c2_i32_80 = arith.constant 2 : i32
    %205 = arith.addi %204, %c2_i32_80 : i32
    %206 = arith.index_cast %205 : i32 to index
    %207 = memref.load %arg4[%206] : memref<32xf32, #tpu.memory_space<smem>>
    %c8_i32_81 = arith.constant 8 : i32
    %208 = arith.addi %98, %c8_i32_81 : i32
    %c3_i32_82 = arith.constant 3 : i32
    %209 = arith.addi %208, %c3_i32_82 : i32
    %210 = arith.index_cast %209 : i32 to index
    %211 = memref.load %arg4[%210] : memref<32xf32, #tpu.memory_space<smem>>
    %cst_83 = arith.constant 5.000000e-01 : f32
    %212 = arith.mulf %207, %cst_83 : f32
    %213 = arith.subf %199, %212 : f32
    %cst_84 = arith.constant 5.000000e-01 : f32
    %214 = arith.mulf %207, %cst_84 : f32
    %215 = arith.addf %199, %214 : f32
    %cst_85 = arith.constant 5.000000e-01 : f32
    %216 = arith.mulf %211, %cst_85 : f32
    %217 = arith.subf %203, %216 : f32
    %cst_86 = arith.constant 5.000000e-01 : f32
    %218 = arith.mulf %211, %cst_86 : f32
    %219 = arith.addf %203, %218 : f32
    %220 = vector.broadcast %215 : f32 to vector<8x128xf32>
    %221 = arith.minimumf %220, %57 : vector<8x128xf32>
    %222 = vector.broadcast %213 : f32 to vector<8x128xf32>
    %223 = arith.maximumf %222, %56 : vector<8x128xf32>
    %224 = arith.subf %221, %223 : vector<8x128xf32>
    %cst_87 = arith.constant 0.000000e+00 : f32
    %225 = vector.broadcast %cst_87 : f32 to vector<8x128xf32>
    %226 = arith.maximumf %224, %225 : vector<8x128xf32>
    %227 = vector.broadcast %219 : f32 to vector<8x128xf32>
    %228 = arith.minimumf %227, %59 : vector<8x128xf32>
    %229 = vector.broadcast %217 : f32 to vector<8x128xf32>
    %230 = arith.maximumf %229, %58 : vector<8x128xf32>
    %231 = arith.subf %228, %230 : vector<8x128xf32>
    %cst_88 = arith.constant 0.000000e+00 : f32
    %232 = vector.broadcast %cst_88 : f32 to vector<8x128xf32>
    %233 = arith.maximumf %231, %232 : vector<8x128xf32>
    %234 = arith.mulf %226, %233 : vector<8x128xf32>
    %235 = arith.mulf %207, %211 : f32
    %236 = vector.broadcast %235 : f32 to vector<8x128xf32>
    %237 = arith.addf %236, %60 : vector<8x128xf32>
    %238 = arith.subf %237, %234 : vector<8x128xf32>
    %cst_89 = arith.constant 1.000000e-07 : f32
    %239 = vector.broadcast %cst_89 : f32 to vector<8x128xf32>
    %240 = arith.addf %238, %239 : vector<8x128xf32>
    %241 = tpu.reciprocal %240 {approx = true} : vector<8x128xf32> -> vector<8x128xf32>
    %242 = arith.mulf %234, %241 : vector<8x128xf32>
    %243 = arith.maximumf %195, %242 : vector<8x128xf32>
    %c12_i32 = arith.constant 12 : i32
    %244 = arith.addi %98, %c12_i32 : i32
    %c0_i32_90 = arith.constant 0 : i32
    %245 = arith.addi %244, %c0_i32_90 : i32
    %246 = arith.index_cast %245 : i32 to index
    %247 = memref.load %arg4[%246] : memref<32xf32, #tpu.memory_space<smem>>
    %c12_i32_91 = arith.constant 12 : i32
    %248 = arith.addi %98, %c12_i32_91 : i32
    %c1_i32_92 = arith.constant 1 : i32
    %249 = arith.addi %248, %c1_i32_92 : i32
    %250 = arith.index_cast %249 : i32 to index
    %251 = memref.load %arg4[%250] : memref<32xf32, #tpu.memory_space<smem>>
    %c12_i32_93 = arith.constant 12 : i32
    %252 = arith.addi %98, %c12_i32_93 : i32
    %c2_i32_94 = arith.constant 2 : i32
    %253 = arith.addi %252, %c2_i32_94 : i32
    %254 = arith.index_cast %253 : i32 to index
    %255 = memref.load %arg4[%254] : memref<32xf32, #tpu.memory_space<smem>>
    %c12_i32_95 = arith.constant 12 : i32
    %256 = arith.addi %98, %c12_i32_95 : i32
    %c3_i32_96 = arith.constant 3 : i32
    %257 = arith.addi %256, %c3_i32_96 : i32
    %258 = arith.index_cast %257 : i32 to index
    %259 = memref.load %arg4[%258] : memref<32xf32, #tpu.memory_space<smem>>
    %cst_97 = arith.constant 5.000000e-01 : f32
    %260 = arith.mulf %255, %cst_97 : f32
    %261 = arith.subf %247, %260 : f32
    %cst_98 = arith.constant 5.000000e-01 : f32
    %262 = arith.mulf %255, %cst_98 : f32
    %263 = arith.addf %247, %262 : f32
    %cst_99 = arith.constant 5.000000e-01 : f32
    %264 = arith.mulf %259, %cst_99 : f32
    %265 = arith.subf %251, %264 : f32
    %cst_100 = arith.constant 5.000000e-01 : f32
    %266 = arith.mulf %259, %cst_100 : f32
    %267 = arith.addf %251, %266 : f32
    %268 = vector.broadcast %263 : f32 to vector<8x128xf32>
    %269 = arith.minimumf %268, %57 : vector<8x128xf32>
    %270 = vector.broadcast %261 : f32 to vector<8x128xf32>
    %271 = arith.maximumf %270, %56 : vector<8x128xf32>
    %272 = arith.subf %269, %271 : vector<8x128xf32>
    %cst_101 = arith.constant 0.000000e+00 : f32
    %273 = vector.broadcast %cst_101 : f32 to vector<8x128xf32>
    %274 = arith.maximumf %272, %273 : vector<8x128xf32>
    %275 = vector.broadcast %267 : f32 to vector<8x128xf32>
    %276 = arith.minimumf %275, %59 : vector<8x128xf32>
    %277 = vector.broadcast %265 : f32 to vector<8x128xf32>
    %278 = arith.maximumf %277, %58 : vector<8x128xf32>
    %279 = arith.subf %276, %278 : vector<8x128xf32>
    %cst_102 = arith.constant 0.000000e+00 : f32
    %280 = vector.broadcast %cst_102 : f32 to vector<8x128xf32>
    %281 = arith.maximumf %279, %280 : vector<8x128xf32>
    %282 = arith.mulf %274, %281 : vector<8x128xf32>
    %283 = arith.mulf %255, %259 : f32
    %284 = vector.broadcast %283 : f32 to vector<8x128xf32>
    %285 = arith.addf %284, %60 : vector<8x128xf32>
    %286 = arith.subf %285, %282 : vector<8x128xf32>
    %cst_103 = arith.constant 1.000000e-07 : f32
    %287 = vector.broadcast %cst_103 : f32 to vector<8x128xf32>
    %288 = arith.addf %286, %287 : vector<8x128xf32>
    %289 = tpu.reciprocal %288 {approx = true} : vector<8x128xf32> -> vector<8x128xf32>
    %290 = arith.mulf %282, %289 : vector<8x128xf32>
    %291 = arith.maximumf %243, %290 : vector<8x128xf32>
    %cst_104 = arith.constant dense<true> : vector<8x128xi1>
    %292 = arith.xori %96, %cst_104 : vector<8x128xi1>
    %cst_105 = arith.constant 5.000000e-01 : f32
    %293 = vector.broadcast %cst_105 : f32 to vector<8x128xf32>
    %294 = arith.cmpf ole, %291, %293 : vector<8x128xf32>
    %295 = arith.andi %292, %294 : vector<8x128xi1>
    %296 = arith.ori %295, %96 : vector<8x128xi1>
    %297 = arith.andi %14, %296 : vector<8x128xi1>
    %cst_106 = arith.constant 0.000000e+00 : f32
    %298 = vector.broadcast %cst_106 : f32 to vector<8x128xf32>
    %299 = arith.maximumf %49, %298 : vector<8x128xf32>
    %300 = arith.mulf %49, %94 : vector<8x128xf32>
    %301 = arith.subf %299, %300 : vector<8x128xf32>
    %302 = math.absf %49 : vector<8x128xf32>
    %cst_107 = arith.constant 0.000000e+00 : f32
    %303 = vector.broadcast %cst_107 : f32 to vector<8x128xf32>
    %304 = arith.subf %303, %302 : vector<8x128xf32>
    %305 = math.exp %304 : vector<8x128xf32>
    %cst_108 = arith.constant 1.000000e+00 : f32
    %306 = vector.broadcast %cst_108 : f32 to vector<8x128xf32>
    %307 = arith.addf %306, %305 : vector<8x128xf32>
    %308 = math.log %307 : vector<8x128xf32>
    %309 = arith.addf %301, %308 : vector<8x128xf32>
    %310 = arith.index_cast %20 : i32 to index
    %311 = memref.load %arg5[%310] : memref<2xf32, #tpu.memory_space<smem>>
    %cst_109 = arith.constant 0.000000e+00 : f32
    %312 = vector.broadcast %cst_109 : f32 to vector<8x128xf32>
    %313 = arith.select %297, %309, %312 : vector<8x128xi1>, vector<8x128xf32>
    %cst_110 = arith.constant dense<0.000000e+00> : vector<128xf32>
    %314 = vector.multi_reduction <add>, %313, %cst_110 [0] : vector<8x128xf32> to vector<128xf32>
    %315 = vector.shape_cast %314 : vector<128xf32> to vector<1x128xf32>
    %316 = vector.broadcast %311 : f32 to vector<1x128xf32>
    %317 = arith.mulf %316, %315 : vector<1x128xf32>
    %318 = arith.addf %15, %317 : vector<1x128xf32>
    %319 = arith.extui %297 : vector<8x128xi1> to vector<8x128xi32>
    %320 = arith.sitofp %319 : vector<8x128xi32> to vector<8x128xf32>
    %cst_111 = arith.constant dense<0.000000e+00> : vector<128xf32>
    %321 = vector.multi_reduction <add>, %320, %cst_111 [0] : vector<8x128xf32> to vector<128xf32>
    %322 = vector.shape_cast %321 : vector<128xf32> to vector<1x128xf32>
    %323 = vector.broadcast %311 : f32 to vector<1x128xf32>
    %324 = arith.mulf %323, %322 : vector<1x128xf32>
    %325 = arith.addf %16, %324 : vector<1x128xf32>
    %c1_i32_112 = arith.constant 1 : i32
    %326 = arith.muli %arg0, %c1_i32_112 : i32
    %327 = arith.addi %326, %arg1 : i32
    %c2_i32_113 = arith.constant 2 : i32
    %328 = arith.muli %327, %c2_i32_113 : i32
    %c1_i32_114 = arith.constant 1 : i32
    %329 = arith.addi %328, %c1_i32_114 : i32
    %c0_115 = arith.constant 0 : index
    %c5 = arith.constant 5 : index
    %c0_116 = arith.constant 0 : index
    %c0_117 = arith.constant 0 : index
    %330 = vector.load %arg2[%c0_115, %c5, %c0_116, %c0_117] : memref<1x10x8x128xbf16, #tpu.memory_space<vmem>>, vector<1x1x8x128xbf16>
    %331 = vector.shape_cast %330 : vector<1x1x8x128xbf16> to vector<8x128xbf16>
    %332 = arith.extf %331 : vector<8x128xbf16> to vector<8x128xf32>
    %333 = arith.negf %332 : vector<8x128xf32>
    %334 = math.exp %333 : vector<8x128xf32>
    %cst_118 = arith.constant 1.000000e+00 : f32
    %335 = vector.broadcast %cst_118 : f32 to vector<8x128xf32>
    %336 = arith.addf %335, %334 : vector<8x128xf32>
    %337 = arith.divf %335, %336 : vector<8x128xf32>
    %c0_119 = arith.constant 0 : index
    %c6 = arith.constant 6 : index
    %c0_120 = arith.constant 0 : index
    %c0_121 = arith.constant 0 : index
    %338 = vector.load %arg2[%c0_119, %c6, %c0_120, %c0_121] : memref<1x10x8x128xbf16, #tpu.memory_space<vmem>>, vector<1x1x8x128xbf16>
    %339 = vector.shape_cast %338 : vector<1x1x8x128xbf16> to vector<8x128xbf16>
    %340 = arith.extf %339 : vector<8x128xbf16> to vector<8x128xf32>
    %341 = arith.negf %340 : vector<8x128xf32>
    %342 = math.exp %341 : vector<8x128xf32>
    %cst_122 = arith.constant 1.000000e+00 : f32
    %343 = vector.broadcast %cst_122 : f32 to vector<8x128xf32>
    %344 = arith.addf %343, %342 : vector<8x128xf32>
    %345 = arith.divf %343, %344 : vector<8x128xf32>
    %c0_123 = arith.constant 0 : index
    %c7 = arith.constant 7 : index
    %c0_124 = arith.constant 0 : index
    %c0_125 = arith.constant 0 : index
    %346 = vector.load %arg2[%c0_123, %c7, %c0_124, %c0_125] : memref<1x10x8x128xbf16, #tpu.memory_space<vmem>>, vector<1x1x8x128xbf16>
    %347 = vector.shape_cast %346 : vector<1x1x8x128xbf16> to vector<8x128xbf16>
    %348 = arith.extf %347 : vector<8x128xbf16> to vector<8x128xf32>
    %349 = math.exp %348 : vector<8x128xf32>
    %350 = arith.mulf %349, %8 : vector<8x128xf32>
    %c0_126 = arith.constant 0 : index
    %c8 = arith.constant 8 : index
    %c0_127 = arith.constant 0 : index
    %c0_128 = arith.constant 0 : index
    %351 = vector.load %arg2[%c0_126, %c8, %c0_127, %c0_128] : memref<1x10x8x128xbf16, #tpu.memory_space<vmem>>, vector<1x1x8x128xbf16>
    %352 = vector.shape_cast %351 : vector<1x1x8x128xbf16> to vector<8x128xbf16>
    %353 = arith.extf %352 : vector<8x128xbf16> to vector<8x128xf32>
    %354 = math.exp %353 : vector<8x128xf32>
    %355 = arith.mulf %354, %10 : vector<8x128xf32>
    %c0_129 = arith.constant 0 : index
    %c9 = arith.constant 9 : index
    %c0_130 = arith.constant 0 : index
    %c0_131 = arith.constant 0 : index
    %356 = vector.load %arg2[%c0_129, %c9, %c0_130, %c0_131] : memref<1x10x8x128xbf16, #tpu.memory_space<vmem>>, vector<1x1x8x128xbf16>
    %357 = vector.shape_cast %356 : vector<1x1x8x128xbf16> to vector<8x128xbf16>
    %358 = arith.extf %357 : vector<8x128xbf16> to vector<8x128xf32>
    %359 = arith.addf %337, %4 : vector<8x128xf32>
    %360 = arith.addf %345, %6 : vector<8x128xf32>
    %cst_132 = arith.constant 5.000000e-01 : f32
    %361 = vector.broadcast %cst_132 : f32 to vector<8x128xf32>
    %362 = arith.mulf %350, %361 : vector<8x128xf32>
    %cst_133 = arith.constant 5.000000e-01 : f32
    %363 = vector.broadcast %cst_133 : f32 to vector<8x128xf32>
    %364 = arith.mulf %355, %363 : vector<8x128xf32>
    %365 = arith.subf %359, %362 : vector<8x128xf32>
    %366 = arith.addf %359, %362 : vector<8x128xf32>
    %367 = arith.subf %360, %364 : vector<8x128xf32>
    %368 = arith.addf %360, %364 : vector<8x128xf32>
    %369 = arith.mulf %350, %355 : vector<8x128xf32>
    %c4_i32_134 = arith.constant 4 : i32
    %370 = arith.muli %329, %c4_i32_134 : i32
    %cst_135 = arith.constant 0.000000e+00 : f32
    %371 = vector.broadcast %cst_135 : f32 to vector<8x128xf32>
    %c0_i32_136 = arith.constant 0 : i32
    %372 = arith.addi %370, %c0_i32_136 : i32
    %373 = arith.index_cast %372 : i32 to index
    %374 = memref.load %arg3[%373] : memref<8xf32, #tpu.memory_space<smem>>
    %375 = vector.broadcast %374 : f32 to vector<8x128xf32>
    %376 = arith.cmpf oeq, %12, %375 : vector<8x128xf32>
    %377 = arith.extui %376 : vector<8x128xi1> to vector<8x128xi32>
    %378 = arith.sitofp %377 : vector<8x128xi32> to vector<8x128xf32>
    %379 = arith.maximumf %371, %378 : vector<8x128xf32>
    %c1_i32_137 = arith.constant 1 : i32
    %380 = arith.addi %370, %c1_i32_137 : i32
    %381 = arith.index_cast %380 : i32 to index
    %382 = memref.load %arg3[%381] : memref<8xf32, #tpu.memory_space<smem>>
    %383 = vector.broadcast %382 : f32 to vector<8x128xf32>
    %384 = arith.cmpf oeq, %12, %383 : vector<8x128xf32>
    %385 = arith.extui %384 : vector<8x128xi1> to vector<8x128xi32>
    %386 = arith.sitofp %385 : vector<8x128xi32> to vector<8x128xf32>
    %387 = arith.maximumf %379, %386 : vector<8x128xf32>
    %c2_i32_138 = arith.constant 2 : i32
    %388 = arith.addi %370, %c2_i32_138 : i32
    %389 = arith.index_cast %388 : i32 to index
    %390 = memref.load %arg3[%389] : memref<8xf32, #tpu.memory_space<smem>>
    %391 = vector.broadcast %390 : f32 to vector<8x128xf32>
    %392 = arith.cmpf oeq, %12, %391 : vector<8x128xf32>
    %393 = arith.extui %392 : vector<8x128xi1> to vector<8x128xi32>
    %394 = arith.sitofp %393 : vector<8x128xi32> to vector<8x128xf32>
    %395 = arith.maximumf %387, %394 : vector<8x128xf32>
    %c3_i32_139 = arith.constant 3 : i32
    %396 = arith.addi %370, %c3_i32_139 : i32
    %397 = arith.index_cast %396 : i32 to index
    %398 = memref.load %arg3[%397] : memref<8xf32, #tpu.memory_space<smem>>
    %399 = vector.broadcast %398 : f32 to vector<8x128xf32>
    %400 = arith.cmpf oeq, %12, %399 : vector<8x128xf32>
    %401 = arith.extui %400 : vector<8x128xi1> to vector<8x128xi32>
    %402 = arith.sitofp %401 : vector<8x128xi32> to vector<8x128xf32>
    %403 = arith.maximumf %395, %402 : vector<8x128xf32>
    %cst_140 = arith.constant 5.000000e-01 : f32
    %404 = vector.broadcast %cst_140 : f32 to vector<8x128xf32>
    %405 = arith.cmpf ogt, %403, %404 : vector<8x128xf32>
    %c4_i32_141 = arith.constant 4 : i32
    %406 = arith.muli %329, %c4_i32_141 : i32
    %c4_i32_142 = arith.constant 4 : i32
    %407 = arith.muli %406, %c4_i32_142 : i32
    %cst_143 = arith.constant 0.000000e+00 : f32
    %408 = vector.broadcast %cst_143 : f32 to vector<8x128xf32>
    %c0_i32_144 = arith.constant 0 : i32
    %409 = arith.addi %407, %c0_i32_144 : i32
    %c0_i32_145 = arith.constant 0 : i32
    %410 = arith.addi %409, %c0_i32_145 : i32
    %411 = arith.index_cast %410 : i32 to index
    %412 = memref.load %arg4[%411] : memref<32xf32, #tpu.memory_space<smem>>
    %c0_i32_146 = arith.constant 0 : i32
    %413 = arith.addi %407, %c0_i32_146 : i32
    %c1_i32_147 = arith.constant 1 : i32
    %414 = arith.addi %413, %c1_i32_147 : i32
    %415 = arith.index_cast %414 : i32 to index
    %416 = memref.load %arg4[%415] : memref<32xf32, #tpu.memory_space<smem>>
    %c0_i32_148 = arith.constant 0 : i32
    %417 = arith.addi %407, %c0_i32_148 : i32
    %c2_i32_149 = arith.constant 2 : i32
    %418 = arith.addi %417, %c2_i32_149 : i32
    %419 = arith.index_cast %418 : i32 to index
    %420 = memref.load %arg4[%419] : memref<32xf32, #tpu.memory_space<smem>>
    %c0_i32_150 = arith.constant 0 : i32
    %421 = arith.addi %407, %c0_i32_150 : i32
    %c3_i32_151 = arith.constant 3 : i32
    %422 = arith.addi %421, %c3_i32_151 : i32
    %423 = arith.index_cast %422 : i32 to index
    %424 = memref.load %arg4[%423] : memref<32xf32, #tpu.memory_space<smem>>
    %cst_152 = arith.constant 5.000000e-01 : f32
    %425 = arith.mulf %420, %cst_152 : f32
    %426 = arith.subf %412, %425 : f32
    %cst_153 = arith.constant 5.000000e-01 : f32
    %427 = arith.mulf %420, %cst_153 : f32
    %428 = arith.addf %412, %427 : f32
    %cst_154 = arith.constant 5.000000e-01 : f32
    %429 = arith.mulf %424, %cst_154 : f32
    %430 = arith.subf %416, %429 : f32
    %cst_155 = arith.constant 5.000000e-01 : f32
    %431 = arith.mulf %424, %cst_155 : f32
    %432 = arith.addf %416, %431 : f32
    %433 = vector.broadcast %428 : f32 to vector<8x128xf32>
    %434 = arith.minimumf %433, %366 : vector<8x128xf32>
    %435 = vector.broadcast %426 : f32 to vector<8x128xf32>
    %436 = arith.maximumf %435, %365 : vector<8x128xf32>
    %437 = arith.subf %434, %436 : vector<8x128xf32>
    %cst_156 = arith.constant 0.000000e+00 : f32
    %438 = vector.broadcast %cst_156 : f32 to vector<8x128xf32>
    %439 = arith.maximumf %437, %438 : vector<8x128xf32>
    %440 = vector.broadcast %432 : f32 to vector<8x128xf32>
    %441 = arith.minimumf %440, %368 : vector<8x128xf32>
    %442 = vector.broadcast %430 : f32 to vector<8x128xf32>
    %443 = arith.maximumf %442, %367 : vector<8x128xf32>
    %444 = arith.subf %441, %443 : vector<8x128xf32>
    %cst_157 = arith.constant 0.000000e+00 : f32
    %445 = vector.broadcast %cst_157 : f32 to vector<8x128xf32>
    %446 = arith.maximumf %444, %445 : vector<8x128xf32>
    %447 = arith.mulf %439, %446 : vector<8x128xf32>
    %448 = arith.mulf %420, %424 : f32
    %449 = vector.broadcast %448 : f32 to vector<8x128xf32>
    %450 = arith.addf %449, %369 : vector<8x128xf32>
    %451 = arith.subf %450, %447 : vector<8x128xf32>
    %cst_158 = arith.constant 1.000000e-07 : f32
    %452 = vector.broadcast %cst_158 : f32 to vector<8x128xf32>
    %453 = arith.addf %451, %452 : vector<8x128xf32>
    %454 = tpu.reciprocal %453 {approx = true} : vector<8x128xf32> -> vector<8x128xf32>
    %455 = arith.mulf %447, %454 : vector<8x128xf32>
    %456 = arith.maximumf %408, %455 : vector<8x128xf32>
    %c4_i32_159 = arith.constant 4 : i32
    %457 = arith.addi %407, %c4_i32_159 : i32
    %c0_i32_160 = arith.constant 0 : i32
    %458 = arith.addi %457, %c0_i32_160 : i32
    %459 = arith.index_cast %458 : i32 to index
    %460 = memref.load %arg4[%459] : memref<32xf32, #tpu.memory_space<smem>>
    %c4_i32_161 = arith.constant 4 : i32
    %461 = arith.addi %407, %c4_i32_161 : i32
    %c1_i32_162 = arith.constant 1 : i32
    %462 = arith.addi %461, %c1_i32_162 : i32
    %463 = arith.index_cast %462 : i32 to index
    %464 = memref.load %arg4[%463] : memref<32xf32, #tpu.memory_space<smem>>
    %c4_i32_163 = arith.constant 4 : i32
    %465 = arith.addi %407, %c4_i32_163 : i32
    %c2_i32_164 = arith.constant 2 : i32
    %466 = arith.addi %465, %c2_i32_164 : i32
    %467 = arith.index_cast %466 : i32 to index
    %468 = memref.load %arg4[%467] : memref<32xf32, #tpu.memory_space<smem>>
    %c4_i32_165 = arith.constant 4 : i32
    %469 = arith.addi %407, %c4_i32_165 : i32
    %c3_i32_166 = arith.constant 3 : i32
    %470 = arith.addi %469, %c3_i32_166 : i32
    %471 = arith.index_cast %470 : i32 to index
    %472 = memref.load %arg4[%471] : memref<32xf32, #tpu.memory_space<smem>>
    %cst_167 = arith.constant 5.000000e-01 : f32
    %473 = arith.mulf %468, %cst_167 : f32
    %474 = arith.subf %460, %473 : f32
    %cst_168 = arith.constant 5.000000e-01 : f32
    %475 = arith.mulf %468, %cst_168 : f32
    %476 = arith.addf %460, %475 : f32
    %cst_169 = arith.constant 5.000000e-01 : f32
    %477 = arith.mulf %472, %cst_169 : f32
    %478 = arith.subf %464, %477 : f32
    %cst_170 = arith.constant 5.000000e-01 : f32
    %479 = arith.mulf %472, %cst_170 : f32
    %480 = arith.addf %464, %479 : f32
    %481 = vector.broadcast %476 : f32 to vector<8x128xf32>
    %482 = arith.minimumf %481, %366 : vector<8x128xf32>
    %483 = vector.broadcast %474 : f32 to vector<8x128xf32>
    %484 = arith.maximumf %483, %365 : vector<8x128xf32>
    %485 = arith.subf %482, %484 : vector<8x128xf32>
    %cst_171 = arith.constant 0.000000e+00 : f32
    %486 = vector.broadcast %cst_171 : f32 to vector<8x128xf32>
    %487 = arith.maximumf %485, %486 : vector<8x128xf32>
    %488 = vector.broadcast %480 : f32 to vector<8x128xf32>
    %489 = arith.minimumf %488, %368 : vector<8x128xf32>
    %490 = vector.broadcast %478 : f32 to vector<8x128xf32>
    %491 = arith.maximumf %490, %367 : vector<8x128xf32>
    %492 = arith.subf %489, %491 : vector<8x128xf32>
    %cst_172 = arith.constant 0.000000e+00 : f32
    %493 = vector.broadcast %cst_172 : f32 to vector<8x128xf32>
    %494 = arith.maximumf %492, %493 : vector<8x128xf32>
    %495 = arith.mulf %487, %494 : vector<8x128xf32>
    %496 = arith.mulf %468, %472 : f32
    %497 = vector.broadcast %496 : f32 to vector<8x128xf32>
    %498 = arith.addf %497, %369 : vector<8x128xf32>
    %499 = arith.subf %498, %495 : vector<8x128xf32>
    %cst_173 = arith.constant 1.000000e-07 : f32
    %500 = vector.broadcast %cst_173 : f32 to vector<8x128xf32>
    %501 = arith.addf %499, %500 : vector<8x128xf32>
    %502 = tpu.reciprocal %501 {approx = true} : vector<8x128xf32> -> vector<8x128xf32>
    %503 = arith.mulf %495, %502 : vector<8x128xf32>
    %504 = arith.maximumf %456, %503 : vector<8x128xf32>
    %c8_i32_174 = arith.constant 8 : i32
    %505 = arith.addi %407, %c8_i32_174 : i32
    %c0_i32_175 = arith.constant 0 : i32
    %506 = arith.addi %505, %c0_i32_175 : i32
    %507 = arith.index_cast %506 : i32 to index
    %508 = memref.load %arg4[%507] : memref<32xf32, #tpu.memory_space<smem>>
    %c8_i32_176 = arith.constant 8 : i32
    %509 = arith.addi %407, %c8_i32_176 : i32
    %c1_i32_177 = arith.constant 1 : i32
    %510 = arith.addi %509, %c1_i32_177 : i32
    %511 = arith.index_cast %510 : i32 to index
    %512 = memref.load %arg4[%511] : memref<32xf32, #tpu.memory_space<smem>>
    %c8_i32_178 = arith.constant 8 : i32
    %513 = arith.addi %407, %c8_i32_178 : i32
    %c2_i32_179 = arith.constant 2 : i32
    %514 = arith.addi %513, %c2_i32_179 : i32
    %515 = arith.index_cast %514 : i32 to index
    %516 = memref.load %arg4[%515] : memref<32xf32, #tpu.memory_space<smem>>
    %c8_i32_180 = arith.constant 8 : i32
    %517 = arith.addi %407, %c8_i32_180 : i32
    %c3_i32_181 = arith.constant 3 : i32
    %518 = arith.addi %517, %c3_i32_181 : i32
    %519 = arith.index_cast %518 : i32 to index
    %520 = memref.load %arg4[%519] : memref<32xf32, #tpu.memory_space<smem>>
    %cst_182 = arith.constant 5.000000e-01 : f32
    %521 = arith.mulf %516, %cst_182 : f32
    %522 = arith.subf %508, %521 : f32
    %cst_183 = arith.constant 5.000000e-01 : f32
    %523 = arith.mulf %516, %cst_183 : f32
    %524 = arith.addf %508, %523 : f32
    %cst_184 = arith.constant 5.000000e-01 : f32
    %525 = arith.mulf %520, %cst_184 : f32
    %526 = arith.subf %512, %525 : f32
    %cst_185 = arith.constant 5.000000e-01 : f32
    %527 = arith.mulf %520, %cst_185 : f32
    %528 = arith.addf %512, %527 : f32
    %529 = vector.broadcast %524 : f32 to vector<8x128xf32>
    %530 = arith.minimumf %529, %366 : vector<8x128xf32>
    %531 = vector.broadcast %522 : f32 to vector<8x128xf32>
    %532 = arith.maximumf %531, %365 : vector<8x128xf32>
    %533 = arith.subf %530, %532 : vector<8x128xf32>
    %cst_186 = arith.constant 0.000000e+00 : f32
    %534 = vector.broadcast %cst_186 : f32 to vector<8x128xf32>
    %535 = arith.maximumf %533, %534 : vector<8x128xf32>
    %536 = vector.broadcast %528 : f32 to vector<8x128xf32>
    %537 = arith.minimumf %536, %368 : vector<8x128xf32>
    %538 = vector.broadcast %526 : f32 to vector<8x128xf32>
    %539 = arith.maximumf %538, %367 : vector<8x128xf32>
    %540 = arith.subf %537, %539 : vector<8x128xf32>
    %cst_187 = arith.constant 0.000000e+00 : f32
    %541 = vector.broadcast %cst_187 : f32 to vector<8x128xf32>
    %542 = arith.maximumf %540, %541 : vector<8x128xf32>
    %543 = arith.mulf %535, %542 : vector<8x128xf32>
    %544 = arith.mulf %516, %520 : f32
    %545 = vector.broadcast %544 : f32 to vector<8x128xf32>
    %546 = arith.addf %545, %369 : vector<8x128xf32>
    %547 = arith.subf %546, %543 : vector<8x128xf32>
    %cst_188 = arith.constant 1.000000e-07 : f32
    %548 = vector.broadcast %cst_188 : f32 to vector<8x128xf32>
    %549 = arith.addf %547, %548 : vector<8x128xf32>
    %550 = tpu.reciprocal %549 {approx = true} : vector<8x128xf32> -> vector<8x128xf32>
    %551 = arith.mulf %543, %550 : vector<8x128xf32>
    %552 = arith.maximumf %504, %551 : vector<8x128xf32>
    %c12_i32_189 = arith.constant 12 : i32
    %553 = arith.addi %407, %c12_i32_189 : i32
    %c0_i32_190 = arith.constant 0 : i32
    %554 = arith.addi %553, %c0_i32_190 : i32
    %555 = arith.index_cast %554 : i32 to index
    %556 = memref.load %arg4[%555] : memref<32xf32, #tpu.memory_space<smem>>
    %c12_i32_191 = arith.constant 12 : i32
    %557 = arith.addi %407, %c12_i32_191 : i32
    %c1_i32_192 = arith.constant 1 : i32
    %558 = arith.addi %557, %c1_i32_192 : i32
    %559 = arith.index_cast %558 : i32 to index
    %560 = memref.load %arg4[%559] : memref<32xf32, #tpu.memory_space<smem>>
    %c12_i32_193 = arith.constant 12 : i32
    %561 = arith.addi %407, %c12_i32_193 : i32
    %c2_i32_194 = arith.constant 2 : i32
    %562 = arith.addi %561, %c2_i32_194 : i32
    %563 = arith.index_cast %562 : i32 to index
    %564 = memref.load %arg4[%563] : memref<32xf32, #tpu.memory_space<smem>>
    %c12_i32_195 = arith.constant 12 : i32
    %565 = arith.addi %407, %c12_i32_195 : i32
    %c3_i32_196 = arith.constant 3 : i32
    %566 = arith.addi %565, %c3_i32_196 : i32
    %567 = arith.index_cast %566 : i32 to index
    %568 = memref.load %arg4[%567] : memref<32xf32, #tpu.memory_space<smem>>
    %cst_197 = arith.constant 5.000000e-01 : f32
    %569 = arith.mulf %564, %cst_197 : f32
    %570 = arith.subf %556, %569 : f32
    %cst_198 = arith.constant 5.000000e-01 : f32
    %571 = arith.mulf %564, %cst_198 : f32
    %572 = arith.addf %556, %571 : f32
    %cst_199 = arith.constant 5.000000e-01 : f32
    %573 = arith.mulf %568, %cst_199 : f32
    %574 = arith.subf %560, %573 : f32
    %cst_200 = arith.constant 5.000000e-01 : f32
    %575 = arith.mulf %568, %cst_200 : f32
    %576 = arith.addf %560, %575 : f32
    %577 = vector.broadcast %572 : f32 to vector<8x128xf32>
    %578 = arith.minimumf %577, %366 : vector<8x128xf32>
    %579 = vector.broadcast %570 : f32 to vector<8x128xf32>
    %580 = arith.maximumf %579, %365 : vector<8x128xf32>
    %581 = arith.subf %578, %580 : vector<8x128xf32>
    %cst_201 = arith.constant 0.000000e+00 : f32
    %582 = vector.broadcast %cst_201 : f32 to vector<8x128xf32>
    %583 = arith.maximumf %581, %582 : vector<8x128xf32>
    %584 = vector.broadcast %576 : f32 to vector<8x128xf32>
    %585 = arith.minimumf %584, %368 : vector<8x128xf32>
    %586 = vector.broadcast %574 : f32 to vector<8x128xf32>
    %587 = arith.maximumf %586, %367 : vector<8x128xf32>
    %588 = arith.subf %585, %587 : vector<8x128xf32>
    %cst_202 = arith.constant 0.000000e+00 : f32
    %589 = vector.broadcast %cst_202 : f32 to vector<8x128xf32>
    %590 = arith.maximumf %588, %589 : vector<8x128xf32>
    %591 = arith.mulf %583, %590 : vector<8x128xf32>
    %592 = arith.mulf %564, %568 : f32
    %593 = vector.broadcast %592 : f32 to vector<8x128xf32>
    %594 = arith.addf %593, %369 : vector<8x128xf32>
    %595 = arith.subf %594, %591 : vector<8x128xf32>
    %cst_203 = arith.constant 1.000000e-07 : f32
    %596 = vector.broadcast %cst_203 : f32 to vector<8x128xf32>
    %597 = arith.addf %595, %596 : vector<8x128xf32>
    %598 = tpu.reciprocal %597 {approx = true} : vector<8x128xf32> -> vector<8x128xf32>
    %599 = arith.mulf %591, %598 : vector<8x128xf32>
    %600 = arith.maximumf %552, %599 : vector<8x128xf32>
    %cst_204 = arith.constant dense<true> : vector<8x128xi1>
    %601 = arith.xori %405, %cst_204 : vector<8x128xi1>
    %cst_205 = arith.constant 5.000000e-01 : f32
    %602 = vector.broadcast %cst_205 : f32 to vector<8x128xf32>
    %603 = arith.cmpf ole, %600, %602 : vector<8x128xf32>
    %604 = arith.andi %601, %603 : vector<8x128xi1>
    %605 = arith.ori %604, %405 : vector<8x128xi1>
    %606 = arith.andi %14, %605 : vector<8x128xi1>
    %cst_206 = arith.constant 0.000000e+00 : f32
    %607 = vector.broadcast %cst_206 : f32 to vector<8x128xf32>
    %608 = arith.maximumf %358, %607 : vector<8x128xf32>
    %609 = arith.mulf %358, %403 : vector<8x128xf32>
    %610 = arith.subf %608, %609 : vector<8x128xf32>
    %611 = math.absf %358 : vector<8x128xf32>
    %cst_207 = arith.constant 0.000000e+00 : f32
    %612 = vector.broadcast %cst_207 : f32 to vector<8x128xf32>
    %613 = arith.subf %612, %611 : vector<8x128xf32>
    %614 = math.exp %613 : vector<8x128xf32>
    %cst_208 = arith.constant 1.000000e+00 : f32
    %615 = vector.broadcast %cst_208 : f32 to vector<8x128xf32>
    %616 = arith.addf %615, %614 : vector<8x128xf32>
    %617 = math.log %616 : vector<8x128xf32>
    %618 = arith.addf %610, %617 : vector<8x128xf32>
    %619 = arith.index_cast %329 : i32 to index
    %620 = memref.load %arg5[%619] : memref<2xf32, #tpu.memory_space<smem>>
    %cst_209 = arith.constant 0.000000e+00 : f32
    %621 = vector.broadcast %cst_209 : f32 to vector<8x128xf32>
    %622 = arith.select %606, %618, %621 : vector<8x128xi1>, vector<8x128xf32>
    %cst_210 = arith.constant dense<0.000000e+00> : vector<128xf32>
    %623 = vector.multi_reduction <add>, %622, %cst_210 [0] : vector<8x128xf32> to vector<128xf32>
    %624 = vector.shape_cast %623 : vector<128xf32> to vector<1x128xf32>
    %625 = vector.broadcast %620 : f32 to vector<1x128xf32>
    %626 = arith.mulf %625, %624 : vector<1x128xf32>
    %627 = arith.addf %318, %626 : vector<1x128xf32>
    %628 = arith.extui %606 : vector<8x128xi1> to vector<8x128xi32>
    %629 = arith.sitofp %628 : vector<8x128xi32> to vector<8x128xf32>
    %cst_211 = arith.constant dense<0.000000e+00> : vector<128xf32>
    %630 = vector.multi_reduction <add>, %629, %cst_211 [0] : vector<8x128xf32> to vector<128xf32>
    %631 = vector.shape_cast %630 : vector<128xf32> to vector<1x128xf32>
    %632 = vector.broadcast %620 : f32 to vector<1x128xf32>
    %633 = arith.mulf %632, %631 : vector<1x128xf32>
    %634 = arith.addf %325, %633 : vector<1x128xf32>
    %635 = tpu.iota {dimensions = array<i32: 0>} : vector<8x128xi32>
    %c0_i32_212 = arith.constant 0 : i32
    %636 = vector.broadcast %c0_i32_212 : i32 to vector<8x128xi32>
    %637 = arith.cmpi eq, %635, %636 : vector<8x128xi32>
    %cst_213 = arith.constant 0.000000e+00 : f32
    %638 = vector.shape_cast %627 : vector<1x128xf32> to vector<1x128xf32>
    %639 = vector.broadcast %638 : vector<1x128xf32> to vector<8x128xf32>
    %640 = vector.broadcast %cst_213 : f32 to vector<8x128xf32>
    %641 = arith.select %637, %639, %640 : vector<8x128xi1>, vector<8x128xf32>
    %c1_i32_214 = arith.constant 1 : i32
    %642 = vector.broadcast %c1_i32_214 : i32 to vector<8x128xi32>
    %643 = arith.cmpi eq, %635, %642 : vector<8x128xi32>
    %cst_215 = arith.constant 0.000000e+00 : f32
    %644 = vector.shape_cast %634 : vector<1x128xf32> to vector<1x128xf32>
    %645 = vector.broadcast %644 : vector<1x128xf32> to vector<8x128xf32>
    %646 = vector.broadcast %cst_215 : f32 to vector<8x128xf32>
    %647 = arith.select %643, %645, %646 : vector<8x128xi1>, vector<8x128xf32>
    %648 = arith.addf %641, %647 : vector<8x128xf32>
    %c0_216 = arith.constant 0 : index
    %c0_217 = arith.constant 0 : index
    %c0_218 = arith.constant 0 : index
    %649 = vector.load %arg6[%c0_216, %c0_217, %c0_218] : memref<1x8x128xf32, #tpu.memory_space<vmem>>, vector<1x8x128xf32>
    %650 = vector.shape_cast %648 : vector<8x128xf32> to vector<1x8x128xf32>
    %651 = arith.addf %649, %650 : vector<1x8x128xf32>
    %c0_219 = arith.constant 0 : index
    %c0_220 = arith.constant 0 : index
    %c0_221 = arith.constant 0 : index
    %652 = vector.load %arg6[%c0_219, %c0_220, %c0_221] : memref<1x8x128xf32, #tpu.memory_space<vmem>>, vector<1x8x128xf32>
    tpu.vector_store %arg6[%c0_219, %c0_220, %c0_221], %651 {strides = array<i32>} : memref<1x8x128xf32, #tpu.memory_space<vmem>>, vector<1x8x128xf32>,
    return
  }
  func.func @transform_0(%arg0: i32, %arg1: i32) -> (i32, i32, i32, i32) {
    %c1_i32 = arith.constant 1 : i32
    %0 = arith.muli %arg0, %c1_i32 : i32
    %1 = arith.addi %0, %arg1 : i32
    %c0_i32 = arith.constant 0 : i32
    %c0_i32_0 = arith.constant 0 : i32
    %c0_i32_1 = arith.constant 0 : i32
    %c0_i32_2 = arith.constant 0 : i32
    return %1, %c0_i32, %c0_i32_0, %c0_i32_1 : i32, i32, i32, i32
  }
  func.func @transform_1(%arg0: i32, %arg1: i32) -> i32 {
    %c0_i32 = arith.constant 0 : i32
    %c0_i32_0 = arith.constant 0 : i32
    return %c0_i32 : i32
  }
  func.func @transform_2(%arg0: i32, %arg1: i32) -> i32 {
    %c0_i32 = arith.constant 0 : i32
    %c0_i32_0 = arith.constant 0 : i32
    return %c0_i32 : i32
  }
  func.func @transform_3(%arg0: i32, %arg1: i32) -> i32 {
    %c0_i32 = arith.constant 0 : i32
    %c0_i32_0 = arith.constant 0 : i32
    return %c0_i32 : i32
  }
  func.func @transform_4(%arg0: i32, %arg1: i32) -> (i32, i32, i32) {
    %c0_i32 = arith.constant 0 : i32
    %c0_i32_0 = arith.constant 0 : i32
    %c0_i32_1 = arith.constant 0 : i32
    return %arg0, %c0_i32, %c0_i32_0 : i32, i32, i32
  }
}

</mosaic_0001>

<bundles_post_ra>
// kernel: _yolo_loss_impl.1
= control target key start
LH: loop header
LB: loop body
LE: loop exit
PB: predicated region body
PF: predicated region fallthrough
CT: control target
= control target key end

     0   :  { %9 = vsyncpa [#allocation4], 0  ;;  %s1218_s0 = inlined_call_operand.vmem [shape: bf16[1,10,8,128], index: 0, kind: input, shape index: {}]   ;;  %s1219_s1 = inlined_call_operand.vmem [shape: f32[8], index: 1, kind: input, shape index: {}]   ;;  %s1220_s2 = inlined_call_operand.vmem [shape: f32[32], index: 2, kind: input, shape index: {}]   ;;  %s1221_s3 = inlined_call_operand.vmem [shape: f32[2], index: 3, kind: input, shape index: {}]   ;;  %s1222_s4 = inlined_call_operand.vmem [shape: f32[1,8,128], index: 4, kind: output, shape index: {}]  }
   0x1   :  { %10 = vsyncpa [#allocation6], 0  ;;  %s36_s17 = sshll.u32 %s1220_s2, 4  ;;  %s26_s20 = sshll.u32 %s1219_s1, 4  ;;  %s37_s17 = int_to_ptr.vmem [resolvable:$true] %s36_s17  ;;  %s27_s20 = int_to_ptr.vmem [resolvable:$true] %s26_s20 }
   0x2   :  { %s758_s21 = scalar_lea.vmem %s37_s17, 16  ;;  %p763_p1 = scmp.lt.s32.totalorder %s37_s17, %s37_s17 }
   0x3   :  { %p759_p0 = scmp.ne.s32.totalorder %s37_s17, %s758_s21  ;;  %p764_p2 = scmp.lt.s32.totalorder %s758_s21, %s758_s21 }
   0x5   :  { %p765_p3 = por %p764_p2, %p763_p1 }
   0x7   :  { %p766_p4 = pnand %p765_p3, %p759_p0 }
   0x9   :  { %769 = shalt.err (!%p766_p4)
}
   0xa   :  { %s798_s22 = smov [#allocation5]   ;;  %s770_s23 = scalar_lea.vmem %s27_s20, 16 }
   0xb   :  { %39 = dma.vmem_to_smem %s37_s17, 16, %s798_s22, [#allocation6]  }
   0xc   :  { %p771_p5 = scmp.ne.s32.totalorder %s27_s20, %s770_s23  ;;  %p775_p6 = scmp.lt.s32.totalorder %s27_s20, %s27_s20 }
   0xd   :  { %p776_p7 = scmp.lt.s32.totalorder %s770_s23, %s770_s23 }
   0xf   :  { %p777_p8 = por %p776_p7, %p775_p6 }
  0x11   :  { %p778_p9 = pnand %p777_p8, %p771_p5 }
  0x13   :  { %781 = shalt.err (!%p778_p9)
}
  0x14   :  { %s799_s2 = smov [#allocation3]   ;;  %s46_s25 = sshll.u32 %s1221_s3, 4  ;;  %s47_s25 = int_to_ptr.vmem [resolvable:$true] %s46_s25 }
  0x15   :  { %29 = dma.vmem_to_smem %s27_s20, 16, %s799_s2, [#allocation4]  }
  0x16   :  { %s782_s26 = scalar_lea.vmem %s47_s25, 16  ;;  %p787_p11 = scmp.lt.s32.totalorder %s47_s25, %s47_s25 }
  0x17   :  { %p783_p10 = scmp.ne.s32.totalorder %s47_s25, %s782_s26  ;;  %p788_p12 = scmp.lt.s32.totalorder %s782_s26, %s782_s26 }
  0x19   :  { %p789_p13 = por %p788_p12, %p787_p11 }
  0x1b   :  { %p790_p0 = pnand %p789_p13, %p783_p10 }
  0x1d   :  { %793 = shalt.err (!%p790_p0)
}
  0x1e   :  { %s800_s27 = smov [#allocation7]  }
  0x1f   :  { %49 = dma.vmem_to_smem %s47_s25, 16, %s800_s27, [#allocation6]  }
  0x20   :  { %794 = dma.done.wait [#allocation4], 16  }
  0x21   :  { %795 = vsyncadd [#allocation4], 4294967280 }
  0x22   :  { %796 = dma.done.wait [#allocation6], 32  }
  0x23   :  { %797 = vsyncadd [#allocation6], 4294967264 }
  0x24   :  { %59 = sfence }
  0x25   :  { %v78_v0 = vlaneseq  ;;  %v125_v1 = vld [vmem:[%s1218_s0] sm:$0xff]   ;;  %v646_v2 = vld [vmem:[%s1218_s0 + $0x8] sm:$0xff]   ;;  %v648_v7 = vld [vmem:[%s1218_s0 + $0x10] sm:$0xff]   ;;  %s852_s9 = sld [smem:[#allocation3]]  ;;  %v801_v34 = vmov 0.0   ;;  %vm802_vm10 = vmmov 1  }
  0x26   :  { %v126_v3 = vunpack.c.l.bf16 %v125_v1  ;;  %v135_v4 = vunpack.c.h.bf16 %v125_v1  ;;  %v144_v10 = vunpack.c.l.bf16 %v646_v2  ;;  %v150_v12 = vunpack.c.h.bf16 %v646_v2  ;;  %v674_v13 = vld [vmem:[%s1218_s0 + $0x18] sm:$0xff]   ;;  %s854_s10 = sld [smem:[#allocation5 + $0x2]]  ;;  %v892_v33 = vld [vmem:[%s1218_s0 + $0x20] sm:$0xff]  }
  0x27   :  { %v843_v5 = vshrl.u32 %v78_v0, 7  ;;  %v81_v6 = vand.u32 127, %v78_v0  ;;  %v375_v14 = vunpack.c.h.bf16 %v648_v7  ;;  %v384_v17 = vunpack.c.l.bf16 %v674_v13  ;;  %s858_s11 = sld [smem:[#allocation5 + $0x3]] }
  0x28   :  { %v643_v8 = vmul.f32 -1.442695, %v126_v3  ;;  %v645_v9 = vmul.f32 -1.442695, %v135_v4  ;;  %v145_v16 = vmul.f32 1.442695, %v144_v10  ;;  %v393_v24 = vunpack.c.h.bf16 %v674_v13 }
  0x29   :  { %v82_v11 = vmul.u32 128, %v843_v5  ;;  %v151_v19 = vmul.f32 1.442695, %v150_v12  ;;  %s196_s12 = sld [smem:[#allocation5]]  ;;  %v673_v20 = vmul.f32 -1.442695, %v375_v14  ;;  %v881_v29 = vunpack.c.l.bf16 %v648_v7 }
  0x2a   :  { %710 = vpow2.f32 %v643_v8  ;;  %s861_s13 = sld [smem:[#allocation5 + $0x1]]  ;;  %v675_v22 = vmul.f32 -1.442695, %v384_v17  ;;  %v394_v27 = vmul.f32 1.442695, %v393_v24  ;;  %v399_v39 = vunpack.c.l.bf16 %v892_v33 }
  0x2b   :  { %v83_v15 = vadd.s32 %v82_v11, %v81_v6  ;;  %712 = vpow2.f32 %v645_v9  ;;  %s863_s14 = sld [smem:[#allocation5 + $0x6]]  ;;  %v343_v38 = vand.u32 2147483647, %v881_v29  ;;  %v168_v55 = vstv %s852_s9 }
  0x2c   :  { %714 = vpow2.f32 %v145_v16  ;;  %s865_s15 = sld [smem:[#allocation5 + $0x7]]  ;;  %s203_s16 = smul.f32 0.5, %s854_s10  ;;  %v400_v50 = vmul.f32 1.442695, %v399_v39 }
  0x2d   :  { %v856_v18 = vcvt.s32.f32 %v83_v15  ;;  %716 = vpow2.f32 %v151_v19  ;;  %s868_s17 = sld [smem:[#allocation5 + $0x4]]  ;;  %s206_s19 = smul.f32 0.5, %s858_s11  ;;  %v344_v48 = vsub.f32 0.0, %v343_v38 }
  0x2e   :  { %718 = vpow2.f32 %v673_v20  ;;  %s870_s18 = sld [smem:[#allocation3 + $0x1]]  ;;  %s222_s6 = smul.f32 %s858_s11, %s854_s10 }
  0x2f   :  { %v86_v21 = vmul.f32 0.00390625, %v856_v18  ;;  %s873_s20 = sld [smem:[#allocation5 + $0x5]]  ;;  %720 = vpow2.f32 %v675_v22  ;;  %v945_v58 = vmul.f32 1.442695, %v344_v48  ;;  %vm1065_vm3 = vcmp.eq.f32.partialorder %v856_v18, %v168_v55 }
  0x30   :  { %s876_s21 = sld [smem:[#allocation5 + $0x8]]  ;;  %722 = vpow2.f32 %v394_v27  ;;  %v223_v0 = vstv %s222_s6  ;;  %vm122_vm15 = vcmp.lt.f32.partialorder %v856_v18, 768.0 }
  0x31   :  { %v87_v23 = vfloor.f32 %v86_v21  ;;  %s878_s22 = ssub.f32 %s196_s12, %s203_s16  ;;  %s238_s23 = smul.f32 0.5, %s863_s14 }
  0x32   :  { %s883_s2 = sadd.f32 %s203_s16, %s196_s12  ;;  %s241_s24 = smul.f32 0.5, %s865_s15 }
  0x33   :  { %v88_v25 = vmul.f32 256.0, %v87_v23  ;;  %vm95_vm0 = vcmp.eq.f32.partialorder %v87_v23, 0.0  ;;  %vm98_vm1 = vcmp.eq.f32.partialorder %v87_v23, 1.0  ;;  %s886_s1 = ssub.f32 %s861_s13, %s206_s19  ;;  %vm101_vm2 = vcmp.eq.f32.partialorder %v87_v23, 2.0  ;;  %s257_s8 = smul.f32 %s865_s15, %s863_s14 }
  0x34   :  { %v96_v35 = vsel %vm95_vm0, 3.5, %v801_v34  ;;  %v97_v36 = vsel %vm95_vm0, 6.0, %v801_v34  ;;  %s897_s27 = sadd.f32 %s861_s13, %s206_s19  ;;  %v209_v56 = vstv %s883_s2  ;;  %v211_v57 = vstv %s878_s22 }
  0x35   :  { %v89_v26 = vsub.f32 %v856_v18, %v88_v25  ;;  %s900_s28 = ssub.f32 %s868_s17, %s238_s23  ;;  %v99_v41 = vsel %vm98_vm1, 6.0, %v96_v35  ;;  %v100_v42 = vsel %vm98_vm1, 5.0, %v97_v36  ;;  %v217_v63 = vstv %s886_s1 }
  0x36   :  { %s903_s29 = sadd.f32 %s868_s17, %s238_s23  ;;  %v102_v46 = vsel %vm101_vm2, 5.5, %v99_v41  ;;  %v920_v47 = vsel %vm101_vm2, 10.0, %v100_v42  ;;  %v215_v62 = vstv %s897_s27  ;;  %v258_v1 = vstv %s257_s8 }
  0x37   :  { %v711_v28 = vpop.eup %710  ;;  %v91_v31 = vmul.f32 0.0625, %v89_v26  ;;  %s914_s0 = ssub.f32 %s873_s20, %s241_s24  ;;  %v246_v6 = vstv %s900_s28 }
  0x38   :  { %v713_v30 = vpop.eup %712  ;;  %v130_v32 = vadd.f32 1.0, %v711_v28  ;;  %s916_s3 = sld [smem:[#allocation5 + $0xa]]  ;;  %v244_v4 = vstv %s903_s29 }
  0x39   :  { %v139_v37 = vadd.f32 1.0, %v713_v30  ;;  %v907_v40 = vfloor.f32 %v91_v31  ;;  %v715_v43 = vpop.eup %714  ;;  %s918_s30 = sld [smem:[#allocation5 + $0xb]]  ;;  %v252_v10 = vstv %s914_s0 }
  0x3a   :  { %724 = vrcp.f32 %v130_v32  ;;  %v717_v44 = vpop.eup %716  ;;  %s922_s5 = sld [smem:[#allocation5 + $0x9]]  ;;  %v147_v52 = vmul.f32 %v715_v43, %v102_v46 }
  0x3b   :  { %726 = vrcp.f32 %v139_v37  ;;  %v719_v45 = vpop.eup %718  ;;  %v93_v49 = vmul.f32 16.0, %v907_v40  ;;  %s927_s7 = sld [smem:[#allocation5 + $0xc]]  ;;  %v153_v53 = vmul.f32 %v717_v44, %v920_v47 }
  0x3c   :  { %v721_v51 = vpop.eup %720  ;;  %s931_s12 = sld [smem:[#allocation5 + $0xe]]  ;;  %v379_v54 = vadd.f32 1.0, %v719_v45  ;;  %728 = vpow2.f32 %v400_v50  ;;  %v159_v3 = vmul.f32 0.5, %v147_v52 }
  0x3d   :  { %s934_s13 = sld [smem:[#allocation5 + $0xf]]  ;;  %v947_v59 = vsub.f32 %v89_v26, %v93_v49  ;;  %v949_v60 = vmul.f32 %v153_v53, %v147_v52  ;;  %v388_v61 = vadd.f32 1.0, %v721_v51  ;;  %v723_v2 = vpop.eup %722  ;;  %v160_v8 = vmul.f32 0.5, %v153_v53 }
  0x3e   :  { %s942_s10 = sadd.f32 %s873_s20, %s241_s24  ;;  %s273_s11 = smul.f32 0.5, %s916_s3  ;;  %730 = vrcp.f32 %v379_v54  ;;  %v989_v20 = vmul.f32 %v723_v2, %v102_v46 }
  0x3f   :  { %s276_s14 = smul.f32 0.5, %s918_s30  ;;  %s952_s16 = sld [smem:[#allocation5 + $0xd]]  ;;  %v974_v14 = vadd.f32 %v223_v0, %v949_v60  ;;  %v977_v15 = vadd.f32 %v258_v1, %v949_v60  ;;  %732 = vrcp.f32 %v388_v61 }
  0x40   :  { %s957_s15 = ssub.f32 %s876_s21, %s273_s11  ;;  %s292_s17 = smul.f32 %s918_s30, %s916_s3  ;;  %v250_v9 = vstv %s942_s10  ;;  %734 = vpow2.f32 %v945_v58  ;;  %v1050_v58 = vunpack.c.h.bf16 %v892_v33 }
  0x41   :  { %s964_s19 = sadd.f32 %s876_s21, %s273_s11 }
  0x42   :  { %s969_s20 = ssub.f32 %s922_s5, %s276_s14  ;;  %v293_v11 = vstv %s292_s17  ;;  %s308_s22 = smul.f32 0.5, %s931_s12  ;;  %v281_v19 = vstv %s957_s15 }
  0x43   :  { %s980_s21 = sadd.f32 %s922_s5, %s276_s14  ;;  %v279_v17 = vstv %s964_s19  ;;  %s311_s2 = smul.f32 0.5, %s934_s13  ;;  %v995_v24 = vadd.f32 %v293_v11, %v949_v60 }
  0x44   :  { %s986_s23 = ssub.f32 %s927_s7, %s308_s22  ;;  %v287_v23 = vstv %s969_s20  ;;  %s327_s0 = smul.f32 %s934_s13, %s931_s12 }
  0x45   :  { %s991_s1 = sld [smem:[#allocation3 + $0x2]]  ;;  %v285_v27 = vstv %s980_s21 }
  0x46   :  { %s997_s24 = sld [smem:[#allocation3 + $0x3]]  ;;  %v316_v28 = vstv %s986_s23 }
  0x47   :  { %v725_v7 = vpop.eup %724  ;;  %s310_s25 = sadd.f32 %s927_s7, %s308_s22 }
  0x48   :  { %v727_v12 = vpop.eup %726  ;;  %v157_v13 = vadd.f32 %v725_v7, %v947_v59  ;;  %s1003_s26 = ssub.f32 %s952_s16, %s311_s2 }
  0x49   :  { %v158_v16 = vadd.f32 %v727_v12, %v907_v40  ;;  %s313_s27 = sadd.f32 %s952_s16, %s311_s2  ;;  %v314_v53 = vstv %s310_s25  ;;  %v729_v54 = vpop.eup %728 }
  0x4a   :  { %v161_v21 = vsub.f32 %v157_v13, %v159_v3  ;;  %v162_v22 = vadd.f32 %v159_v3, %v157_v13  ;;  %s1006_s28 = sld [smem:[#allocation3 + $0x4]]  ;;  %v322_v2 = vstv %s1003_s26  ;;  %v402_v12 = vmul.f32 %v729_v54, %v920_v47 }
  0x4b   :  { %v163_v25 = vsub.f32 %v158_v16, %v160_v8  ;;  %v164_v26 = vadd.f32 %v160_v8, %v158_v16  ;;  %s1008_s29 = sld [smem:[#allocation3 + $0x5]]  ;;  %v320_v1 = vstv %s313_s27  ;;  %v731_v3 = vpop.eup %730  ;;  %v408_v47 = vmul.f32 0.5, %v989_v20 }
  0x4c   :  { %v210_v30 = vmin.f32 %v209_v56, %v162_v22  ;;  %v212_v31 = vmax.f32 %v211_v57, %v161_v21  ;;  %v245_v32 = vmin.f32 %v244_v4, %v162_v22  ;;  %v247_v35 = vmax.f32 %v246_v6, %v161_v21  ;;  %s1012_s3 = sld [smem:[#allocation5 + $0x10]]  ;;  %v733_v13 = vpop.eup %732 }
  0x4d   :  { %v216_v36 = vmin.f32 %v215_v62, %v164_v26  ;;  %v218_v37 = vmax.f32 %v217_v63, %v163_v25  ;;  %v251_v38 = vmin.f32 %v250_v9, %v164_v26  ;;  %v253_v39 = vmax.f32 %v252_v10, %v163_v25  ;;  %s1015_s30 = sld [smem:[#allocation5 + $0x12]] }
  0x4e   :  { %v213_v41 = vsub.f32 %v210_v30, %v212_v31  ;;  %v248_v42 = vsub.f32 %v245_v32, %v247_v35  ;;  %v280_v43 = vmin.f32 %v279_v17, %v162_v22  ;;  %v282_v44 = vmax.f32 %v281_v19, %v161_v21  ;;  %s1021_s5 = sld [smem:[#allocation5 + $0x13]] }
  0x4f   :  { %v219_v45 = vsub.f32 %v216_v36, %v218_v37  ;;  %v254_v46 = vsub.f32 %v251_v38, %v253_v39  ;;  %v286_v48 = vmin.f32 %v285_v27, %v164_v26  ;;  %v288_v49 = vmax.f32 %v287_v23, %v163_v25  ;;  %s1025_s6 = sld [smem:[#allocation5 + $0x11]] }
  0x50   :  { %v214_v50 = vmax.f32 %v213_v41, 0.0  ;;  %v249_v51 = vmax.f32 %v248_v42, 0.0  ;;  %v283_v52 = vsub.f32 %v280_v43, %v282_v44  ;;  %v315_v62 = vmin.f32 %v314_v53, %v162_v22  ;;  %s1033_s7 = sld [smem:[#allocation5 + $0x14]] }
  0x51   :  { %v220_v56 = vmax.f32 %v219_v45, 0.0  ;;  %v255_v57 = vmax.f32 %v254_v46, 0.0  ;;  %v289_v61 = vsub.f32 %v286_v48, %v288_v49  ;;  %v317_v0 = vmax.f32 %v316_v28, %v161_v21  ;;  %s1042_s8 = sld [smem:[#allocation5 + $0x17]] }
  0x52   :  { %v284_v63 = vmax.f32 %v283_v52, 0.0  ;;  %v321_v8 = vmin.f32 %v320_v1, %v164_v26  ;;  %v175_v9 = vstv %s870_s18  ;;  %v323_v11 = vmax.f32 %v322_v2, %v163_v25  ;;  %s1037_s18 = sld [smem:[#allocation5 + $0x16]] }
  0x53   :  { %v1017_v4 = vmul.f32 %v220_v56, %v214_v50  ;;  %v1019_v6 = vmul.f32 %v255_v57, %v249_v51  ;;  %v290_v7 = vmax.f32 %v289_v61, 0.0  ;;  %v318_v10 = vsub.f32 %v315_v62, %v317_v0  ;;  %s452_s12 = smul.f32 0.5, %s1015_s30  ;;  %s1047_s13 = sld [smem:[#allocation5 + $0x15]] }
  0x54   :  { %v328_v21 = vstv %s327_s0  ;;  %v324_v23 = vsub.f32 %v321_v8, %v323_v11  ;;  %v406_v25 = vadd.f32 %v731_v3, %v947_v59  ;;  %v407_v59 = vadd.f32 %v733_v13, %v907_v40  ;;  %s455_s10 = smul.f32 0.5, %s1021_s5  ;;  %s1053_s11 = sld [smem:[#allocation5 + $0x18]]  ;;  %v735_v8 = vpop.eup %734 }
  0x55   :  { %v225_v16 = vsub.f32 %v974_v14, %v1017_v4  ;;  %v260_v17 = vsub.f32 %v977_v15, %v1019_v6  ;;  %v1031_v19 = vmul.f32 %v290_v7, %v284_v63  ;;  %v319_v22 = vmax.f32 %v318_v10, 0.0  ;;  %s453_s14 = ssub.f32 %s1012_s3, %s452_s12  ;;  %s471_s15 = smul.f32 %s1021_s5, %s1015_s30 }
  0x56   :  { %v325_v27 = vmax.f32 %v324_v23, 0.0  ;;  %v329_v28 = vadd.f32 %v328_v21, %v949_v60  ;;  %v409_v30 = vmul.f32 0.5, %v402_v12  ;;  %v1057_v60 = vsub.f32 %v406_v25, %v408_v47  ;;  %s454_s16 = sadd.f32 %s1012_s3, %s452_s12 }
  0x57   :  { %v226_v26 = vadd.f32 1e-07, %v225_v16  ;;  %v261_v14 = vadd.f32 1e-07, %v260_v17  ;;  %v295_v15 = vsub.f32 %v995_v24, %v1031_v19  ;;  %v1059_v31 = vadd.f32 %v408_v47, %v406_v25  ;;  %s456_s9 = ssub.f32 %s1025_s6, %s455_s10  ;;  %s490_s20 = smul.f32 0.5, %s1042_s8 }
  0x58   :  { %v1055_v40 = vmul.f32 %v325_v27, %v319_v22  ;;  %vm1070_vm4 = vcmp.eq.f32.partialorder %v856_v18, %v175_v9  ;;  %v1078_v36 = vsub.f32 %v407_v59, %v409_v30  ;;  %v1080_v37 = vadd.f32 %v409_v30, %v407_v59  ;;  %s487_s17 = smul.f32 0.5, %s1037_s18  ;;  %s457_s19 = sadd.f32 %s1025_s6, %s455_s10 }
  0x59   :  { %736 = vrcp.f32 %v226_v26  ;;  %v296_v24 = vadd.f32 1e-07, %v295_v15  ;;  %v460_v38 = vstv %s453_s14  ;;  %v182_v55 = vstv %s991_s1  ;;  %s491_s23 = ssub.f32 %s1047_s13, %s490_s20  ;;  %s506_s1 = smul.f32 %s1042_s8, %s1037_s18 }
  0x5a   :  { %738 = vrcp.f32 %v261_v14  ;;  %v330_v35 = vsub.f32 %v329_v28, %v1055_v40  ;;  %v458_v39 = vstv %s454_s16  ;;  %v592_v41 = vand.u32 2147483647, %v1050_v58  ;;  %s488_s22 = ssub.f32 %s1033_s7, %s487_s17 }
  0x5b   :  { %740 = vrcp.f32 %v296_v24  ;;  %v649_v42 = vsel %vm1065_vm3, 1.0, %v801_v34  ;;  %v459_v44 = vmin.f32 %v458_v39, %v1059_v31  ;;  %v461_v45 = vmax.f32 %v460_v38, %v1057_v60  ;;  %s489_s21 = sadd.f32 %s1033_s7, %s487_s17 }
  0x5c   :  { %v331_v43 = vadd.f32 1e-07, %v330_v35  ;;  %v651_v46 = vsel %vm1070_vm4, 1.0, %v801_v34  ;;  %v1098_v48 = vmul.f32 %v402_v12, %v989_v20  ;;  %v464_v49 = vstv %s457_s19  ;;  %s492_s2 = sadd.f32 %s1047_s13, %s490_s20 }
  0x5d   :  { %v466_v50 = vstv %s456_s9  ;;  %v462_v51 = vsub.f32 %v459_v44, %v461_v45  ;;  %v465_v52 = vmin.f32 %v464_v49, %v1080_v37  ;;  %v472_v54 = vstv %s471_s15  ;;  %s1109_s25 = sld [smem:[#allocation5 + $0x1a]] }
  0x5e   :  { %v467_v53 = vmax.f32 %v466_v50, %v1078_v36  ;;  %742 = vrcp.f32 %v331_v43  ;;  %v493_v56 = vstv %s489_s21  ;;  %v495_v57 = vstv %s488_s22  ;;  %s1112_s26 = sld [smem:[#allocation5 + $0x1b]] }
  0x5f   :  { %v593_v61 = vsub.f32 0.0, %v592_v41  ;;  %v463_v62 = vmax.f32 %v462_v51, 0.0  ;;  %v494_v20 = vmin.f32 %v493_v56, %v1059_v31  ;;  %v496_v0 = vmax.f32 %v495_v57, %v1057_v60  ;;  %s1116_s27 = sld [smem:[#allocation5 + $0x19]] }
  0x60   :  { %v468_v63 = vsub.f32 %v465_v52, %v467_v53  ;;  %v172_v1 = vmax.f32 %v649_v42, 0.0  ;;  %v473_v2 = vadd.f32 %v472_v54, %v1098_v48  ;;  %v499_v3 = vstv %s492_s2  ;;  %s1120_s0 = sld [smem:[#allocation5 + $0x1c]] }
  0x61   :  { %v501_v7 = vstv %s491_s23  ;;  %v497_v10 = vsub.f32 %v494_v20, %v496_v0  ;;  %v500_v11 = vmin.f32 %v499_v3, %v1080_v37  ;;  %vm183_vm5 = vcmp.eq.f32.partialorder %v856_v18, %v182_v55  ;;  %s1124_s3 = sld [smem:[#allocation5 + $0x1e]] }
  0x62   :  { %v469_v9 = vmax.f32 %v468_v63, 0.0  ;;  %v502_v12 = vmax.f32 %v501_v7, %v1078_v36  ;;  %v189_v13 = vstv %s997_s24  ;;  %v507_v16 = vstv %s506_s1  ;;  %s1127_s30 = sld [smem:[#allocation5 + $0x1f]] }
  0x63   :  { %v498_v22 = vmax.f32 %v497_v10, 0.0  ;;  %v594_v25 = vmul.f32 1.442695, %v593_v61  ;;  %v179_v26 = vmax.f32 %v172_v1, %v651_v46  ;;  %v653_v15 = vsel %vm183_vm5, 1.0, %v801_v34  ;;  %s522_s24 = smul.f32 0.5, %s1109_s25  ;;  %s1133_s5 = sld [smem:[#allocation5 + $0x1d]] }
  0x64   :  { %v1122_v21 = vmul.f32 %v469_v9, %v463_v62  ;;  %v503_v23 = vsub.f32 %v500_v11, %v502_v12  ;;  %v508_v59 = vadd.f32 %v507_v16, %v1098_v48  ;;  %vm190_vm6 = vcmp.eq.f32.partialorder %v856_v18, %v189_v13  ;;  %s1137_s6 = sld [smem:[#allocation3 + $0x6]]  ;;  %s525_s7 = smul.f32 0.5, %s1112_s26 }
  0x65   :  { %v347_v33 = vadd.f32 1.0, %v735_v8  ;;  %s523_s18 = ssub.f32 %s1053_s11, %s522_s24  ;;  %744 = vpow2.f32 %v594_v25  ;;  %v186_v35 = vmax.f32 %v179_v26, %v653_v15  ;;  %s541_s12 = smul.f32 %s1112_s26, %s1109_s25  ;;  %v655_v55 = vsel %vm190_vm6, 1.0, %v801_v34 }
  0x66   :  { %v737_v17 = vpop.eup %736  ;;  %v474_v27 = vsub.f32 %v473_v2, %v1122_v21  ;;  %v504_v28 = vmax.f32 %v503_v23, 0.0  ;;  %s524_s8 = sadd.f32 %s1053_s11, %s522_s24  ;;  %v417_v46 = vstv %s1006_s28  ;;  %v424_v16 = vstv %s1008_s29 }
  0x67   :  { %v739_v47 = vpop.eup %738  ;;  %v228_v14 = vmul.f32 %v737_v17, %v1017_v4  ;;  %s526_s13 = ssub.f32 %s1116_s27, %s525_s7  ;;  %v530_v39 = vstv %s523_s18  ;;  %s557_s10 = smul.f32 0.5, %s1124_s3  ;;  %746 = vlog2.f32 %v347_v33  ;;  %v1157_v51 = vmax.f32 %v186_v35, %v655_v55 }
  0x68   :  { %v263_v30 = vmul.f32 %v739_v47, %v1019_v6  ;;  %v741_v24 = vpop.eup %740  ;;  %v1140_v32 = vmul.f32 %v504_v28, %v498_v22  ;;  %v475_v38 = vadd.f32 1e-07, %v474_v27  ;;  %s527_s14 = sadd.f32 %s1116_s27, %s525_s7  ;;  %v528_v43 = vstv %s524_s8  ;;  %s560_s16 = smul.f32 0.5, %s1127_s30 }
  0x69   :  { %v229_v4 = vmax.f32 %v228_v14, 0.0  ;;  %v298_v42 = vmul.f32 %v741_v24, %v1031_v19  ;;  %v531_v44 = vmax.f32 %v530_v39, %v1057_v60  ;;  %v529_v49 = vmin.f32 %v528_v43, %v1059_v31  ;;  %s558_s11 = ssub.f32 %s1120_s0, %s557_s10  ;;  %s576_s17 = smul.f32 %s1127_s30, %s1124_s3 }
  0x6a   :  { %v509_v6 = vsub.f32 %v508_v59, %v1140_v32  ;;  %v536_v50 = vstv %s526_s13  ;;  %748 = vrcp.f32 %v475_v38  ;;  %v534_v19 = vstv %s527_s14  ;;  %s559_s15 = sadd.f32 %s1120_s0, %s557_s10 }
  0x6b   :  { %v264_v41 = vmax.f32 %v229_v4, %v263_v30  ;;  %v743_v45 = vpop.eup %742  ;;  %v537_v52 = vmax.f32 %v536_v50, %v1078_v36  ;;  %v532_v54 = vsub.f32 %v529_v49, %v531_v44  ;;  %v535_v56 = vmin.f32 %v534_v19, %v1080_v37  ;;  %s561_s28 = ssub.f32 %s1133_s5, %s560_s16 }
  0x6c   :  { %v510_v53 = vadd.f32 1e-07, %v509_v6  ;;  %v542_v57 = vstv %s541_s12  ;;  %vm1164_vm7 = vcmp.eq.f32.partialorder %v856_v18, %v417_v46  ;;  %s562_s9 = sadd.f32 %s1133_s5, %s560_s16  ;;  %v563_v63 = vstv %s559_s15 }
  0x6d   :  { %v299_v61 = vmax.f32 %v264_v41, %v298_v42  ;;  %v565_v20 = vstv %s558_s11  ;;  %v333_v0 = vmul.f32 %v743_v45, %v1055_v40  ;;  %v533_v1 = vmax.f32 %v532_v54, 0.0  ;;  %s1178_s19 = sld [smem:[#allocation3 + $0x7]] }
  0x6e   :  { %v538_v2 = vsub.f32 %v535_v56, %v537_v52  ;;  %v564_v3 = vmin.f32 %v563_v63, %v1059_v31  ;;  %v543_v7 = vadd.f32 %v542_v57, %v1098_v48  ;;  %v566_v8 = vmax.f32 %v565_v20, %v1057_v60  ;;  %s351_s29 = sld [smem:[#allocation7]] }
  0x6f   :  { %v569_v9 = vstv %s562_s9  ;;  %v571_v10 = vstv %s561_s28  ;;  %750 = vrcp.f32 %v510_v53  ;;  %v577_v17 = vstv %s576_s17  ;;  %s703_s20 = sld [smem:[#allocation7 + $0x1]] }
  0x70   :  { %v539_v11 = vmax.f32 %v538_v2, 0.0  ;;  %v570_v12 = vmin.f32 %v569_v9, %v1080_v37  ;;  %v572_v13 = vmax.f32 %v571_v10, %v1078_v36  ;;  %v567_v40 = vsub.f32 %v564_v3, %v566_v8 }
  0x71   :  { %v334_v22 = vmax.f32 %v299_v61, %v333_v0  ;;  %v680_v31 = vsel %vm1164_vm7, 1.0, %v801_v34  ;;  %vm194_vm8 = vcmp.gt.f32.partialorder %v1157_v51, 0.5  ;;  %vm425_vm9 = vcmp.eq.f32.partialorder %v856_v18, %v424_v16 }
  0x72   :  { %v540_v60 = vmul.f32 %v539_v11, %v533_v1  ;;  %v573_v23 = vsub.f32 %v570_v12, %v572_v13  ;;  %v745_v25 = vpop.eup %744  ;;  %v568_v47 = vmax.f32 %v567_v40, 0.0  ;;  %v578_v26 = vadd.f32 %v577_v17, %v1098_v48  ;;  %vm335_vm11 = vmxor %vm194_vm8, %vm802_vm10 }
  0x73   :  { %v340_v14 = vmax.f32 %v881_v29, 0.0  ;;  %v341_v15 = vmul.f32 %v1157_v51, %v881_v29  ;;  %v421_v27 = vmax.f32 %v680_v31, 0.0  ;;  %v431_v28 = vstv %s1137_s6 }
  0x74   :  { %v544_v36 = vsub.f32 %v543_v7, %v540_v60  ;;  %v574_v37 = vmax.f32 %v573_v23, 0.0  ;;  %vm336_vm12 = vcmp.le.f32.partialorder %v334_v22, 0.5  ;;  %v596_v30 = vadd.f32 1.0, %v745_v25  ;;  %v747_v24 = vpop.eup %746 }
  0x75   :  { %v682_v48 = vsel %vm425_vm9, 1.0, %v801_v34  ;;  %vm432_vm13 = vcmp.eq.f32.partialorder %v856_v18, %v431_v28  ;;  %vm337_vm14 = vmand %vm335_vm11, %vm336_vm12  ;;  %v342_v35 = vsub.f32 %v340_v14, %v341_v15  ;;  %v438_v38 = vstv %s1178_s19 }
  0x76   :  { %v545_v59 = vadd.f32 1e-07, %v544_v36  ;;  %v575_v4 = vmul.f32 %v574_v37, %v568_v47  ;;  %v349_v55 = vmul.f32 0.6931472, %v747_v24  ;;  %v428_v6 = vmax.f32 %v421_v27, %v682_v48  ;;  %vm338_vm0 = vmor %vm337_vm14, %vm194_vm8 }
  0x77   :  { %v749_v33 = vpop.eup %748  ;;  %v684_v41 = vsel %vm432_vm13, 1.0, %v801_v34  ;;  %vm439_vm1 = vcmp.eq.f32.partialorder %v856_v18, %v438_v38  ;;  %vm339_vm2 = vmand %vm122_vm15, %vm338_vm0  ;;  %v589_v61 = vmax.f32 %v1050_v58, 0.0  ;;  %v359_v15 = vstv %s351_s29 }
  0x78   :  { %752 = vrcp.f32 %v545_v59  ;;  %v579_v29 = vsub.f32 %v578_v26, %v575_v4  ;;  %v477_v42 = vmul.f32 %v749_v33, %v1122_v21  ;;  %v350_v44 = vadd.f32 %v349_v55, %v342_v35 }
  0x79   :  { %754 = vlog2.f32 %v596_v30  ;;  %v435_v45 = vmax.f32 %v428_v6, %v684_v41  ;;  %v686_v46 = vsel %vm439_vm1, 1.0, %v801_v34  ;;  %v671_v51 = vsel %vm339_vm2, 1.0, %v801_v34 }
  0x7a   :  { %v580_v39 = vadd.f32 1e-07, %v579_v29  ;;  %v478_v49 = vmax.f32 %v477_v42, 0.0  ;;  %v352_v19 = vsel %vm339_vm2, %v350_v44, 0.0  ;;  %v364_v21 = vrot.slane %v671_v51, 4 }
  0x7b   :  { %v442_v52 = vmax.f32 %v435_v45, %v686_v46  ;;  %v353_v56 = vrot.slane %v352_v19, 4  ;;  %v608_v28 = vstv %s703_s20  ;;  %vm623_vm9 = vcmp.eq.s32.totalorder %v843_v5, 0 }
  0x7c   :  { %756 = vrcp.f32 %v580_v39  ;;  %v751_v43 = vpop.eup %750  ;;  %v365_v2 = vadd.f32 %v671_v51, %v364_v21 }
  0x7d   :  { %v512_v50 = vmul.f32 %v751_v43, %v1140_v32  ;;  %v590_v62 = vmul.f32 %v442_v52, %v1050_v58  ;;  %v354_v1 = vadd.f32 %v353_v56, %v352_v19  ;;  %vm443_vm3 = vcmp.gt.f32.partialorder %v442_v52, 0.5 }
  0x7e   :  { %vm584_vm4 = vmxor %vm443_vm3, %vm802_vm10  ;;  %v366_v10 = vrot.slane %v365_v2, 2  ;;  %vm625_vm10 = vcmp.eq.s32.totalorder %v843_v5, 1 }
  0x7f   :  { %v513_v53 = vmax.f32 %v478_v49, %v512_v50  ;;  %v591_v3 = vsub.f32 %v589_v61, %v590_v62  ;;  %v355_v9 = vrot.slane %v354_v1, 2 }
  0x80   :  { %v367_v58 = vadd.f32 %v366_v10, %v365_v2 }
  0x81   :  { %v356_v12 = vadd.f32 %v355_v9, %v354_v1 }
  0x82   :  { %v368_v31 = vrot.slane %v367_v58, 1 }
  0x83   :  { %v357_v22 = vrot.slane %v356_v12, 1 }
  0x84   :  { %v369_v37 = vadd.f32 %v368_v31, %v367_v58 }
  0x85   :  { %v753_v54 = vpop.eup %752  ;;  %v358_v36 = vadd.f32 %v357_v22, %v356_v12 }
  0x86   :  { %v547_v57 = vmul.f32 %v753_v54, %v540_v60  ;;  %v755_v63 = vpop.eup %754 }
  0x87   :  { %v598_v7 = vmul.f32 0.6931472, %v755_v63  ;;  %v360_v59 = vmul.f32 %v359_v15, %v358_v36 }
  0x88   :  { %v548_v20 = vmax.f32 %v513_v53, %v547_v57 }
  0x89   :  { %v757_v0 = vpop.eup %756  ;;  %v599_v11 = vadd.f32 %v598_v7, %v591_v3 }
  0x8a   :  { %v582_v32 = vmul.f32 %v757_v0, %v575_v4  ;;  %v370_v4 = vmul.f32 %v369_v37, %v359_v15 }
  0x8c   :  { %v583_v8 = vmax.f32 %v548_v20, %v582_v32 }
  0x8e   :  { %vm585_vm5 = vcmp.le.f32.partialorder %v583_v8, 0.5 }
  0x8f   :  { %vm586_vm6 = vmand %vm584_vm4, %vm585_vm5 }
  0x90   :  { %vm587_vm7 = vmor %vm586_vm6, %vm443_vm3 }
  0x91   :  { %vm588_vm8 = vmand %vm122_vm15, %vm587_vm7 }
  0x92   :  { %v601_v13 = vsel %vm588_vm8, %v599_v11, 0.0  ;;  %v704_v16 = vsel %vm588_vm8, 1.0, %v801_v34 }
  0x93   :  { %v602_v40 = vrot.slane %v601_v13, 4  ;;  %v613_v17 = vrot.slane %v704_v16, 4 }
  0x95   :  { %v603_v60 = vadd.f32 %v602_v40, %v601_v13  ;;  %v614_v23 = vadd.f32 %v704_v16, %v613_v17 }
  0x97   :  { %v604_v25 = vrot.slane %v603_v60, 2  ;;  %v615_v47 = vrot.slane %v614_v23, 2 }
  0x99   :  { %v605_v26 = vadd.f32 %v604_v25, %v603_v60  ;;  %v616_v14 = vadd.f32 %v615_v47, %v614_v23 }
  0x9b   :  { %v606_v18 = vrot.slane %v605_v26, 1  ;;  %v617_v27 = vrot.slane %v616_v14, 1 }
  0x9d   :  { %v607_v34 = vadd.f32 %v606_v18, %v605_v26  ;;  %v618_v30 = vadd.f32 %v617_v27, %v616_v14 }
  0x9f   :  { %v609_v24 = vmul.f32 %v608_v28, %v607_v34  ;;  %v619_v48 = vmul.f32 %v618_v30, %v608_v28 }
  0xa1   :  { %v610_v33 = vadd.f32 %v609_v24, %v360_v59  ;;  %v620_v29 = vadd.f32 %v619_v48, %v370_v4 }
  0xa3   :  { %v624_v35 = vsel %vm623_vm9, %v610_v33, 0.0  ;;  %v626_v38 = vsel %vm625_vm10, %v620_v29, 0.0 }
  0xa4   :  { %v627_v55 = vadd.f32 %v626_v38, %v624_v35 }
  0xa6   :  { %630 = vst [vmem:[%s1222_s4] sm:$0xff] %v627_v55 }
  0xa7   :  { %635 = vsyncpa [#allocation4], 1 }
  0xa8   :  { %636 = vsyncpa [#allocation6], 1 }

</bundles_post_ra>
